<compile_context>
chip_gen: v5e
topology: v5e:2x2
jax: 0.10.0
libtpu: 0.0.40
codegen_flags: <defaults>
</compile_context>

<pallas_src>
import functools
import numpy as np

import jax
import jax.numpy as jnp
from jax.experimental import pallas as pl
from jax.experimental.pallas import tpu as pltpu


# ------------------------------ in-kernel helpers ---------------------------

def _rmsnorm(x, g, eps):
    # x-transformers RMSNorm: x / clamp(||x|| * D^-0.5, eps) * g
    # == x * rsqrt(max(mean(x^2), eps^2)) * g   (rsqrt -> EUP slot)
    ms = jnp.mean(x * x, axis=-1, keepdims=True)
    return x * jax.lax.rsqrt(jnp.maximum(ms, eps * eps)) * g


def _softmax_rows(s):
    s = s - jnp.max(s, axis=-1, keepdims=True)
    p = jnp.exp(s)
    return p * pl.reciprocal(jnp.sum(p, axis=-1, keepdims=True), approx=True)


def _mha_core(q, k, v, heads, dh):
    """Per-head scores/AV on bf16 MXU operands; q already carries the softmax scale.

    q, k, v: (T, heads*dh) f32 (head-major packing along the lane axis).
    Returns (T, heads*dh) bf16 (concatenated per-head attention outputs).
    The head loop is a short static unroll: with head-fused projections the
    per-iteration live set is just (T,dh) slices + one (T,T) block, so vreg
    pressure is low (re-check spills / switch to fori_loop if heads grows).
    """
    q16 = q.astype(jnp.bfloat16)
    k16 = k.astype(jnp.bfloat16)
    v16 = v.astype(jnp.bfloat16)
    avs = []
    for hd in range(heads):
        sl = slice(hd * dh, (hd + 1) * dh)
        s = jax.lax.dot_general(q16[:, sl], k16[:, sl], (((1,), (1,)), ((), ())),
                                preferred_element_type=jnp.float32)      # (T, T)
        p = _softmax_rows(s).astype(jnp.bfloat16)
        avs.append(jnp.dot(p, v16[:, sl], preferred_element_type=jnp.float32))
    return jnp.concatenate(avs, axis=-1).astype(jnp.bfloat16)            # (T, H*dh)


# ----------------------- fused transformer stack (depth) --------------------

def _stack_kernel(x_ref, cos_ref, sin_ref, rot_ref,
                  gattn_ref, wq_ref, wk_ref, wv_ref, wo_ref, bo_ref,
                  gff_ref, w1a_ref, b1a_ref, w1g_ref, b1g_ref, w2_ref, b2_ref,
                  o_ref, h_sc, *, heads, scale, rms_eps):
    l = pl.program_id(1)

    @pl.when(l == 0)
    def _():
        h_sc[...] = x_ref[0]                      # load the carry once per batch row

    h = h_sc[...]                                 # (T, D) f32 activation carry
    T, D = h.shape
    dh = D // heads
    cos = cos_ref[...]                            # (T, D) per-head tiled rope tables
    sin = sin_ref[...]
    rot = rot_ref[...]                            # (D, D) block-diag rotate-half (bf16)

    # ---- attention block: pre-RMSNorm -> fused QKV -> rotary -> MHA -> out-proj -> res
    hn16 = _rmsnorm(h, gattn_ref[0], rms_eps).astype(jnp.bfloat16)
    q = jnp.dot(hn16, wq_ref[0], preferred_element_type=jnp.float32)     # (T, D)
    k = jnp.dot(hn16, wk_ref[0], preferred_element_type=jnp.float32)
    v = jnp.dot(hn16, wv_ref[0], preferred_element_type=jnp.float32)
    # rope: x*cos + rotate_half(x)*sin; rotate_half is a block-diag sign/permutation
    # matmul (bf16 exact for 0/+-1 entries) -- no lane slicing of activations needed.
    q = q * cos + jnp.dot(q.astype(jnp.bfloat16), rot,
                          preferred_element_type=jnp.float32) * sin
    k = k * cos + jnp.dot(k.astype(jnp.bfloat16), rot,
                          preferred_element_type=jnp.float32) * sin
    # TODO(synk): some vendored x-transformers versions also rotate v; q/k only here.
    q = q * scale                                 # fold softmax scale into q (T*D mults)
    av = _mha_core(q, k, v, heads, dh)            # (T, D) bf16
    h = h + jnp.dot(av, wo_ref[0], preferred_element_type=jnp.float32) + bo_ref[0]

    # ---- GLU feed-forward block: pre-RMSNorm -> GEGLU -> Linear -> residual
    hn16 = _rmsnorm(h, gff_ref[0], rms_eps).astype(jnp.bfloat16)
    a = jnp.dot(hn16, w1a_ref[0], preferred_element_type=jnp.float32) + b1a_ref[0]
    g = jnp.dot(hn16, w1g_ref[0], preferred_element_type=jnp.float32) + b1g_ref[0]
    # TODO(synk): PyTorch F.gelu default is exact erf; tanh approximation used here.
    ff = a * jax.nn.gelu(g, approximate=True)
    h = h + jnp.dot(ff.astype(jnp.bfloat16), w2_ref[0],
                    preferred_element_type=jnp.float32) + b2_ref[0]

    h_sc[...] = h                                 # carry to the next layer
    @pl.when(l == pl.num_programs(1) - 1)
    def _():
        o_ref[0] = h                              # write back once per batch row


def fused_transformer_stack(x, cos, sin, rotm, p, heads):
    B, T, D = x.shape
    depth = p['wq'].shape[0]
    dh = D // heads
    kern = functools.partial(_stack_kernel, heads=heads, scale=dh ** -0.5, rms_eps=1e-8)

    def cspec(shape):  # constant table: same block for every (b, l)
        n = len(shape)
        return pl.BlockSpec(shape, lambda b, l, n=n: (0,) * n)

    def wspec(shape):  # depth-stacked weight: indexed by layer l on the leading axis
        blk = (1,) + tuple(shape[1:])
        z = (0,) * (len(shape) - 1)
        return pl.BlockSpec(blk, lambda b, l, z=z: (l,) + z)

    return pl.pallas_call(
        kern,
        out_shape=jax.ShapeDtypeStruct((B, T, D), jnp.float32),
        grid=(B, depth),
        in_specs=[
            pl.BlockSpec((1, T, D), lambda b, l: (b, 0, 0)),
            cspec((T, D)), cspec((T, D)), cspec((D, D)),
            wspec((depth, 1, D)),
            wspec((depth, D, D)), wspec((depth, D, D)), wspec((depth, D, D)),
            wspec((depth, D, D)), wspec((depth, 1, D)),
            wspec((depth, 1, D)),
            wspec((depth, D, D)), wspec((depth, 1, D)),
            wspec((depth, D, D)), wspec((depth, 1, D)),
            wspec((depth, D, D)), wspec((depth, 1, D)),
        ],
        out_specs=pl.BlockSpec((1, T, D), lambda b, l: (b, 0, 0)),
        scratch_shapes=[pltpu.VMEM((T, D), jnp.float32)],     # activation carry
        compiler_params=pltpu.CompilerParams(
            dimension_semantics=("parallel", "arbitrary"),
            # 48 MB is within v7x's 64 MiB/TC; v6e/v5e could raise further.
            vmem_limit_bytes=48 * 1024 * 1024),
    )(x, cos, sin, rotm,
      p['attn_norm_g'], p['wq'], p['wk'], p['wv'], p['wo'], p['bo'],
      p['ff_norm_g'], p['w1a'], p['b1a'], p['w1g'], p['b1g'], p['w2'], p['b2'])


# ------------------- fused pre_combiner + final LN + masked_mean ------------

def _head_kernel(x_ref, lng_ref, lnb_ref, c1w_ref, c1b_ref,
                 gng_ref, gnb_ref, gmat_ref,
                 qw_ref, qb_ref, kw_ref, kb_ref, vw_ref, vb_ref,
                 pw_ref, pb_ref, c2w_ref, c2b_ref, o_ref,
                 *, heads, scale, ln_eps, gn_eps):
    h = x_ref[0]                                                    # (T, D)

    # final LayerNorm of ContinuousTransformerWrapper
    mu = jnp.mean(h, axis=-1, keepdims=True)
    var = jnp.mean(jnp.square(h - mu), axis=-1, keepdims=True)
    h = (h - mu) * jax.lax.rsqrt(var + ln_eps) * lng_ref[...] + lnb_ref[...]

    # pre_combiner[0]: pointwise Conv1d(model_dim -> output_dims)
    h = jnp.dot(h.astype(jnp.bfloat16), c1w_ref[...],
                preferred_element_type=jnp.float32) + c1b_ref[...]  # (T, O)
    O = h.shape[1]
    ch = O // heads

    # AttentionBlock.norm = GroupNorm32: reduce over T first (VPU), then the tiny
    # (1,O)@(O,O) group-average matmul. Kept in f32 (E[x^2]-E[x]^2 cancellation).
    rmean = jnp.mean(h, axis=0, keepdims=True)                      # (1, O)
    rsq = jnp.mean(h * h, axis=0, keepdims=True)
    gmean = jnp.dot(rmean, gmat_ref[...], preferred_element_type=jnp.float32)
    gsq = jnp.dot(rsq, gmat_ref[...], preferred_element_type=jnp.float32)
    gvar = jnp.maximum(gsq - gmean * gmean, 0.0)
    hn16 = ((h - gmean) * jax.lax.rsqrt(gvar + gn_eps) * gng_ref[...]
            + gnb_ref[...]).astype(jnp.bfloat16)

    # fused qkv 1x1 conv (head-major columns) + QKVAttentionLegacy + fused proj_out
    q = jnp.dot(hn16, qw_ref[...], preferred_element_type=jnp.float32) + qb_ref[...]
    k = jnp.dot(hn16, kw_ref[...], preferred_element_type=jnp.float32) + kb_ref[...]
    v = jnp.dot(hn16, vw_ref[...], preferred_element_type=jnp.float32) + vb_ref[...]
    # QKVAttentionLegacy scales q and k by ch^-0.25 each == scores * ch^-0.5
    q = q * scale
    av = _mha_core(q, k, v, heads, ch)                              # (T, O) bf16
    h = h + jnp.dot(av, pw_ref[...], preferred_element_type=jnp.float32) + pb_ref[...]

    # pre_combiner[2]: pointwise Conv1d(output_dims -> output_dims)
    h = jnp.dot(h.astype(jnp.bfloat16), c2w_ref[...],
                preferred_element_type=jnp.float32) + c2b_ref[...]

    # eval-mode masked_mean with an all-ones mask == mean over the sequence axis
    o_ref[0] = jnp.mean(h, axis=0, keepdims=True)


def fused_pre_combiner(h, p, heads):
    B, T, D = h.shape
    O = p['conv1_w'].shape[1]
    ch = O // heads
    kern = functools.partial(_head_kernel, heads=heads, scale=ch ** -0.5,
                             ln_eps=1e-5, gn_eps=1e-5)

    def fs(shape):
        n = len(shape)
        return pl.BlockSpec(shape, lambda b, n=n: (0,) * n)

    out = pl.pallas_call(
        kern,
        out_shape=jax.ShapeDtypeStruct((B, 1, O), jnp.float32),
        grid=(B,),
        in_specs=[
            pl.BlockSpec((1, T, D), lambda b: (b, 0, 0)),
            fs((1, D)), fs((1, D)),
            fs((D, O)), fs((1, O)),
            fs((1, O)), fs((1, O)), fs((O, O)),
            fs((O, O)), fs((1, O)), fs((O, O)), fs((1, O)), fs((O, O)), fs((1, O)),
            fs((O, O)), fs((1, O)),
            fs((O, O)), fs((1, O)),
        ],
        out_specs=pl.BlockSpec((1, 1, O), lambda b: (b, 0, 0)),
        compiler_params=pltpu.CompilerParams(
            dimension_semantics=("parallel",),
            vmem_limit_bytes=48 * 1024 * 1024),
    )(h, p['final_ln_g'], p['final_ln_b'],
      p['conv1_w'], p['conv1_b'],
      p['gn_g'], p['gn_b'], p['gmat'],
      p['qw'], p['qb'], p['kw'], p['kb'], p['vw'], p['vb'],
      p['proj_w'], p['proj_b'],
      p['conv2_w'], p['conv2_b'])
    return out[:, 0, :]


# ------------------------------ host-side tables ----------------------------

def rope_tables(seq_len, dh, rot_dim, heads):
    """cos/sin tables tiled to width heads*dh; dims >= rot_dim get cos=1/sin=0."""
    inv_freq = 1.0 / (10000.0 ** (np.arange(0, rot_dim, 2, dtype=np.float32) / rot_dim))
    pos = np.arange(seq_len, dtype=np.float32)
    freqs = np.einsum('i,j->ij', pos, inv_freq)                  # (T, rot_dim/2)
    emb = np.concatenate([freqs, freqs], axis=-1)                # (T, rot_dim)
    cos, sin = np.cos(emb), np.sin(emb)
    if rot_dim < dh:
        cos = np.concatenate([cos, np.ones((seq_len, dh - rot_dim), np.float32)], -1)
        sin = np.concatenate([sin, np.zeros((seq_len, dh - rot_dim), np.float32)], -1)
    cos = np.tile(cos, (1, heads))                               # act on packed (T, H*dh)
    sin = np.tile(sin, (1, heads))
    return jnp.asarray(cos), jnp.asarray(sin)


def rotate_half_matrix(dh, rot_dim, heads):
    """Block-diag (H*dh, H*dh) matrix M with (x @ M) == per-head rotate_half."""
    half = rot_dim // 2
    m = np.zeros((dh, dh), np.float32)
    for j in range(half):
        m[j + half, j] = -1.0
    for j in range(half, rot_dim):
        m[j - half, j] = 1.0
    full = np.kron(np.eye(heads, dtype=np.float32), m)           # values in {-1,0,1}
    return jnp.asarray(full, dtype=jnp.bfloat16)                 # bf16-exact


def group_average_matrix(channels, groups):
    """(C, C) matrix G with (row_stats @ G)[c] == mean of row_stats over c's group."""
    cpg = channels // groups
    gid = np.arange(channels) // cpg
    g = (gid[:, None] == gid[None, :]).astype(np.float32) / float(cpg)
    return jnp.asarray(g)


# --------------------------- parameters (synthetic) --------------------------

def init_params(key, model_dim, output_dims, heads, depth):
    D, O = model_dim, output_dims
    keys = iter(jax.random.split(key, 64))

    def w(shape, s=0.02, dtype=jnp.bfloat16):
        return (s * jax.random.normal(next(keys), shape, dtype=jnp.float32)).astype(dtype)

    ones = lambda shape: jnp.ones(shape, jnp.float32)
    zeros = lambda shape: jnp.zeros(shape, jnp.float32)

    p = {}
    # --- transformer stack: weights stacked on a leading depth axis, head-fused
    #     projections packed head-major along the last axis.
    p['attn_norm_g'] = ones((depth, 1, D))
    p['wq'] = w((depth, D, D))       # x-transformers to_q/k/v have no bias
    p['wk'] = w((depth, D, D))
    p['wv'] = w((depth, D, D))
    p['wo'] = w((depth, D, D))
    p['bo'] = w((depth, 1, D), dtype=jnp.float32)
    p['ff_norm_g'] = ones((depth, 1, D))
    # GEGLU projection split into value / gate halves (ff_mult=1)
    p['w1a'] = w((depth, D, D)); p['b1a'] = w((depth, 1, D), dtype=jnp.float32)
    p['w1g'] = w((depth, D, D)); p['b1g'] = w((depth, 1, D), dtype=jnp.float32)
    p['w2'] = w((depth, D, D)); p['b2'] = w((depth, 1, D), dtype=jnp.float32)
    # --- final LayerNorm + pre_combiner: Conv1d(D,O,1) -> AttentionBlock(O) -> Conv1d(O,O,1)
    p['final_ln_g'] = ones((1, D)); p['final_ln_b'] = zeros((1, D))
    p['conv1_w'] = w((D, O)); p['conv1_b'] = w((1, O), dtype=jnp.float32)
    p['gn_g'] = ones((1, O)); p['gn_b'] = zeros((1, O))
    p['gmat'] = group_average_matrix(O, 32 if O % 32 == 0 else O)
    # qkv 1x1 conv split per role, head-major columns (QKVAttentionLegacy ordering)
    p['qw'] = w((O, O)); p['qb'] = w((1, O), dtype=jnp.float32)
    p['kw'] = w((O, O)); p['kb'] = w((1, O), dtype=jnp.float32)
    p['vw'] = w((O, O)); p['vb'] = w((1, O), dtype=jnp.float32)
    # NOTE: PyTorch zero-inits AttentionBlock.proj_out; small random weights keep the
    # kernel path non-trivial (synthetic weights, not a checkpoint).
    p['proj_w'] = w((O, O)); p['proj_b'] = zeros((1, O))
    p['conv2_w'] = w((O, O)); p['conv2_b'] = w((1, O), dtype=jnp.float32)
    return p


# --------------------------------- forward ----------------------------------

def collapsing_transformer_forward(params, x, heads):
    B, T, D = x.shape
    assert D % heads == 0
    dh = D // heads
    assert dh % 2 == 0
    # x-transformers partial rotary: rotary_emb_dim = max(dim_head // 2, 32), clamped
    # to the head dim so small test heads stay well-defined.
    rot_dim = min(max(dh // 2, 32), dh)
    cos, sin = rope_tables(T, dh, rot_dim, heads)
    rotm = rotate_half_matrix(dh, rot_dim, heads)

    h = fused_transformer_stack(x.astype(jnp.float32), cos, sin, rotm, params, heads)
    return fused_pre_combiner(h, params, heads)


# ---------------------------------- main -------------------------------------

if __name__ == "__main__":
    B, T = 2, 8
    model_dim, output_dims, heads, depth = 32, 64, 4, 2

    key = jax.random.PRNGKey(0)
    pkey, xkey = jax.random.split(key)
    params = init_params(pkey, model_dim, output_dims, heads, depth)
    x = jax.random.normal(xkey, (B, T, model_dim), dtype=jnp.float32)

    fwd = jax.jit(functools.partial(collapsing_transformer_forward, heads=heads))
    out = fwd(params, x)
    jax.block_until_ready(out)
    assert out.shape == (B, output_dims), out.shape
    assert bool(jnp.all(jnp.isfinite(out)))
    print("KERNEL_OK")
</pallas_src>

<mosaic_0001>
module attributes {stable_mosaic.version = 11 : i64} {
  func.func @_stack_kernel(%arg0: i32, %arg1: i32, %arg2: memref<1x8x32xf32, #tpu.memory_space<vmem>>, %arg3: memref<8x32xf32, #tpu.memory_space<vmem>>, %arg4: memref<8x32xf32, #tpu.memory_space<vmem>>, %arg5: memref<32x32xbf16, #tpu.memory_space<vmem>>, %arg6: memref<1x1x32xf32, #tpu.memory_space<vmem>>, %arg7: memref<1x32x32xbf16, #tpu.memory_space<vmem>>, %arg8: memref<1x32x32xbf16, #tpu.memory_space<vmem>>, %arg9: memref<1x32x32xbf16, #tpu.memory_space<vmem>>, %arg10: memref<1x32x32xbf16, #tpu.memory_space<vmem>>, %arg11: memref<1x1x32xf32, #tpu.memory_space<vmem>>, %arg12: memref<1x1x32xf32, #tpu.memory_space<vmem>>, %arg13: memref<1x32x32xbf16, #tpu.memory_space<vmem>>, %arg14: memref<1x1x32xf32, #tpu.memory_space<vmem>>, %arg15: memref<1x32x32xbf16, #tpu.memory_space<vmem>>, %arg16: memref<1x1x32xf32, #tpu.memory_space<vmem>>, %arg17: memref<1x32x32xbf16, #tpu.memory_space<vmem>>, %arg18: memref<1x1x32xf32, #tpu.memory_space<vmem>>, %arg19: memref<1x8x32xf32, #tpu.memory_space<vmem>>, %arg20: memref<8x32xf32, #tpu.memory_space<vmem>>) attributes {dimension_semantics = [#tpu.dimension_semantics<parallel>, #tpu.dimension_semantics<arbitrary>], iteration_bounds = array<i64: 2, 2>, scalar_prefetch = 0 : i64, scratch_operands = 1 : i64, tpu.core_type = #tpu.core_type<tc>, window_params = [{transform_indices = @transform_0, window_bounds = array<i64: 1, 8, 32>}, {pipeline_mode = #tpu.pipeline_mode<synchronous>, transform_indices = @transform_1, window_bounds = array<i64: 8, 32>}, {pipeline_mode = #tpu.pipeline_mode<synchronous>, transform_indices = @transform_2, window_bounds = array<i64: 8, 32>}, {pipeline_mode = #tpu.pipeline_mode<synchronous>, transform_indices = @transform_3, window_bounds = array<i64: 32, 32>}, {transform_indices = @transform_4, window_bounds = array<i64: 1, 1, 32>}, {transform_indices = @transform_5, window_bounds = array<i64: 1, 32, 32>}, {transform_indices = @transform_6, window_bounds = array<i64: 1, 32, 32>}, {transform_indices = @transform_7, window_bounds = array<i64: 1, 32, 32>}, {transform_indices = @transform_8, window_bounds = array<i64: 1, 32, 32>}, {transform_indices = @transform_9, window_bounds = array<i64: 1, 1, 32>}, {transform_indices = @transform_10, window_bounds = array<i64: 1, 1, 32>}, {transform_indices = @transform_11, window_bounds = array<i64: 1, 32, 32>}, {transform_indices = @transform_12, window_bounds = array<i64: 1, 1, 32>}, {transform_indices = @transform_13, window_bounds = array<i64: 1, 32, 32>}, {transform_indices = @transform_14, window_bounds = array<i64: 1, 1, 32>}, {transform_indices = @transform_15, window_bounds = array<i64: 1, 32, 32>}, {transform_indices = @transform_16, window_bounds = array<i64: 1, 1, 32>}, {transform_indices = @transform_17, window_bounds = array<i64: 1, 8, 32>}]} {
    %c0_i32 = arith.constant 0 : i32
    %0 = arith.cmpi eq, %arg1, %c0_i32 : i32
    %1 = arith.extui %0 : i1 to i32
    %c0_i32_0 = arith.constant 0 : i32
    %2 = arith.cmpi ne, %1, %c0_i32_0 : i32
    scf.if %2 {
      %c0_85 = arith.constant 0 : index
      %c0_86 = arith.constant 0 : index
      %c0_87 = arith.constant 0 : index
      %176 = vector.load %arg2[%c0_85, %c0_86, %c0_87] : memref<1x8x32xf32, #tpu.memory_space<vmem>>, vector<1x8x32xf32>
      %177 = vector.shape_cast %176 : vector<1x8x32xf32> to vector<8x32xf32>
      %c0_88 = arith.constant 0 : index
      %c0_89 = arith.constant 0 : index
      %178 = vector.load %arg20[%c0_88, %c0_89] : memref<8x32xf32, #tpu.memory_space<vmem>>, vector<8x32xf32>
      tpu.vector_store %arg20[%c0_88, %c0_89], %177 {strides = array<i32>} : memref<8x32xf32, #tpu.memory_space<vmem>>, vector<8x32xf32>,
    } else {
    }
    %c0 = arith.constant 0 : index
    %c0_1 = arith.constant 0 : index
    %3 = vector.load %arg20[%c0, %c0_1] : memref<8x32xf32, #tpu.memory_space<vmem>>, vector<8x32xf32>
    %c0_2 = arith.constant 0 : index
    %c0_3 = arith.constant 0 : index
    %4 = vector.load %arg3[%c0_2, %c0_3] : memref<8x32xf32, #tpu.memory_space<vmem>>, vector<8x32xf32>
    %c0_4 = arith.constant 0 : index
    %c0_5 = arith.constant 0 : index
    %5 = vector.load %arg4[%c0_4, %c0_5] : memref<8x32xf32, #tpu.memory_space<vmem>>, vector<8x32xf32>
    %c0_6 = arith.constant 0 : index
    %c0_7 = arith.constant 0 : index
    %6 = vector.load %arg5[%c0_6, %c0_7] : memref<32x32xbf16, #tpu.memory_space<vmem>>, vector<32x32xbf16>
    %c0_8 = arith.constant 0 : index
    %c0_9 = arith.constant 0 : index
    %c0_10 = arith.constant 0 : index
    %7 = vector.load %arg6[%c0_8, %c0_9, %c0_10] : memref<1x1x32xf32, #tpu.memory_space<vmem>>, vector<1x1x32xf32>
    %8 = vector.shape_cast %7 : vector<1x1x32xf32> to vector<1x32xf32>
    %9 = arith.mulf %3, %3 : vector<8x32xf32>
    %cst = arith.constant dense<0.000000e+00> : vector<8xf32>
    %10 = vector.multi_reduction <add>, %9, %cst [1] : vector<8x32xf32> to vector<8xf32>
    %11 = vector.shape_cast %10 : vector<8xf32> to vector<8x1xf32>
    %cst_11 = arith.constant 3.200000e+01 : f32
    %12 = vector.broadcast %cst_11 : f32 to vector<8x1xf32>
    %13 = arith.divf %11, %12 : vector<8x1xf32>
    %cst_12 = arith.constant 1.000000e-16 : f32
    %14 = vector.broadcast %cst_12 : f32 to vector<8x1xf32>
    %15 = arith.maximumf %13, %14 : vector<8x1xf32>
    %16 = math.rsqrt %15 : vector<8x1xf32>
    %17 = vector.broadcast %16 : vector<8x1xf32> to vector<8x32xf32>
    %18 = arith.mulf %3, %17 : vector<8x32xf32>
    %19 = vector.broadcast %8 : vector<1x32xf32> to vector<8x32xf32>
    %20 = arith.mulf %18, %19 : vector<8x32xf32>
    %21 = arith.truncf %20 : vector<8x32xf32> to vector<8x32xbf16>
    %c0_13 = arith.constant 0 : index
    %c0_14 = arith.constant 0 : index
    %c0_15 = arith.constant 0 : index
    %22 = vector.load %arg7[%c0_13, %c0_14, %c0_15] : memref<1x32x32xbf16, #tpu.memory_space<vmem>>, vector<1x32x32xbf16>
    %23 = vector.shape_cast %22 : vector<1x32x32xbf16> to vector<32x32xbf16>
    %cst_16 = arith.constant dense<0.000000e+00> : vector<8x32xf32>
    %24 = tpu.matmul %21, %23, %cst_16 {dimension_numbers = #tpu.dot_dimension_numbers<[1], [0], [0], [1], [0, 0, 1, 1], [], []>} : vector<8x32xbf16>, vector<32x32xbf16>, vector<8x32xf32> -> vector<8x32xf32>
    %c0_17 = arith.constant 0 : index
    %c0_18 = arith.constant 0 : index
    %c0_19 = arith.constant 0 : index
    %25 = vector.load %arg8[%c0_17, %c0_18, %c0_19] : memref<1x32x32xbf16, #tpu.memory_space<vmem>>, vector<1x32x32xbf16>
    %26 = vector.shape_cast %25 : vector<1x32x32xbf16> to vector<32x32xbf16>
    %cst_20 = arith.constant dense<0.000000e+00> : vector<8x32xf32>
    %27 = tpu.matmul %21, %26, %cst_20 {dimension_numbers = #tpu.dot_dimension_numbers<[1], [0], [0], [1], [0, 0, 1, 1], [], []>} : vector<8x32xbf16>, vector<32x32xbf16>, vector<8x32xf32> -> vector<8x32xf32>
    %c0_21 = arith.constant 0 : index
    %c0_22 = arith.constant 0 : index
    %c0_23 = arith.constant 0 : index
    %28 = vector.load %arg9[%c0_21, %c0_22, %c0_23] : memref<1x32x32xbf16, #tpu.memory_space<vmem>>, vector<1x32x32xbf16>
    %29 = vector.shape_cast %28 : vector<1x32x32xbf16> to vector<32x32xbf16>
    %cst_24 = arith.constant dense<0.000000e+00> : vector<8x32xf32>
    %30 = tpu.matmul %21, %29, %cst_24 {dimension_numbers = #tpu.dot_dimension_numbers<[1], [0], [0], [1], [0, 0, 1, 1], [], []>} : vector<8x32xbf16>, vector<32x32xbf16>, vector<8x32xf32> -> vector<8x32xf32>
    %31 = arith.mulf %24, %4 : vector<8x32xf32>
    %32 = arith.truncf %24 : vector<8x32xf32> to vector<8x32xbf16>
    %cst_25 = arith.constant dense<0.000000e+00> : vector<8x32xf32>
    %33 = tpu.matmul %32, %6, %cst_25 {dimension_numbers = #tpu.dot_dimension_numbers<[1], [0], [0], [1], [0, 0, 1, 1], [], []>} : vector<8x32xbf16>, vector<32x32xbf16>, vector<8x32xf32> -> vector<8x32xf32>
    %34 = arith.mulf %33, %5 : vector<8x32xf32>
    %35 = arith.addf %31, %34 : vector<8x32xf32>
    %36 = arith.mulf %27, %4 : vector<8x32xf32>
    %37 = arith.truncf %27 : vector<8x32xf32> to vector<8x32xbf16>
    %cst_26 = arith.constant dense<0.000000e+00> : vector<8x32xf32>
    %38 = tpu.matmul %37, %6, %cst_26 {dimension_numbers = #tpu.dot_dimension_numbers<[1], [0], [0], [1], [0, 0, 1, 1], [], []>} : vector<8x32xbf16>, vector<32x32xbf16>, vector<8x32xf32> -> vector<8x32xf32>
    %39 = arith.mulf %38, %5 : vector<8x32xf32>
    %40 = arith.addf %36, %39 : vector<8x32xf32>
    %cst_27 = arith.constant 0.353553385 : f32
    %41 = vector.broadcast %cst_27 : f32 to vector<8x32xf32>
    %42 = arith.mulf %35, %41 : vector<8x32xf32>
    %43 = arith.truncf %42 : vector<8x32xf32> to vector<8x32xbf16>
    %44 = arith.truncf %40 : vector<8x32xf32> to vector<8x32xbf16>
    %45 = arith.truncf %30 : vector<8x32xf32> to vector<8x32xbf16>
    %46 = vector.extract_strided_slice %43 {offsets = [0, 0], sizes = [8, 8], strides = [1, 1]} : vector<8x32xbf16> to vector<8x8xbf16>
    %47 = vector.extract_strided_slice %44 {offsets = [0, 0], sizes = [8, 8], strides = [1, 1]} : vector<8x32xbf16> to vector<8x8xbf16>
    %cst_28 = arith.constant dense<0.000000e+00> : vector<8x8xf32>
    %48 = tpu.matmul %46, %47, %cst_28 {dimension_numbers = #tpu.dot_dimension_numbers<[1], [1], [0], [0], [0, 0, 1, 0], [], []>} : vector<8x8xbf16>, vector<8x8xbf16>, vector<8x8xf32> -> vector<8x8xf32>
    %cst_29 = arith.constant dense<0xFF800000> : vector<8xf32>
    %49 = vector.multi_reduction <maximumf>, %48, %cst_29 [1] : vector<8x8xf32> to vector<8xf32>
    %50 = vector.shape_cast %49 : vector<8xf32> to vector<8x1xf32>
    %51 = vector.broadcast %50 : vector<8x1xf32> to vector<8x8xf32>
    %52 = arith.subf %48, %51 : vector<8x8xf32>
    %53 = math.exp %52 : vector<8x8xf32>
    %cst_30 = arith.constant dense<0.000000e+00> : vector<8xf32>
    %54 = vector.multi_reduction <add>, %53, %cst_30 [1] : vector<8x8xf32> to vector<8xf32>
    %55 = vector.shape_cast %54 : vector<8xf32> to vector<8x1xf32>
    %56 = tpu.reciprocal %55 {approx = true} : vector<8x1xf32> -> vector<8x1xf32>
    %57 = vector.broadcast %56 : vector<8x1xf32> to vector<8x8xf32>
    %58 = arith.mulf %53, %57 : vector<8x8xf32>
    %59 = arith.truncf %58 : vector<8x8xf32> to vector<8x8xbf16>
    %60 = vector.extract_strided_slice %45 {offsets = [0, 0], sizes = [8, 8], strides = [1, 1]} : vector<8x32xbf16> to vector<8x8xbf16>
    %cst_31 = arith.constant dense<0.000000e+00> : vector<8x8xf32>
    %61 = tpu.matmul %59, %60, %cst_31 {dimension_numbers = #tpu.dot_dimension_numbers<[1], [0], [0], [1], [0, 0, 1, 1], [], []>} : vector<8x8xbf16>, vector<8x8xbf16>, vector<8x8xf32> -> vector<8x8xf32>
    %62 = vector.extract_strided_slice %43 {offsets = [0, 8], sizes = [8, 8], strides = [1, 1]} : vector<8x32xbf16> to vector<8x8xbf16>
    %63 = vector.extract_strided_slice %44 {offsets = [0, 8], sizes = [8, 8], strides = [1, 1]} : vector<8x32xbf16> to vector<8x8xbf16>
    %cst_32 = arith.constant dense<0.000000e+00> : vector<8x8xf32>
    %64 = tpu.matmul %62, %63, %cst_32 {dimension_numbers = #tpu.dot_dimension_numbers<[1], [1], [0], [0], [0, 0, 1, 0], [], []>} : vector<8x8xbf16>, vector<8x8xbf16>, vector<8x8xf32> -> vector<8x8xf32>
    %cst_33 = arith.constant dense<0xFF800000> : vector<8xf32>
    %65 = vector.multi_reduction <maximumf>, %64, %cst_33 [1] : vector<8x8xf32> to vector<8xf32>
    %66 = vector.shape_cast %65 : vector<8xf32> to vector<8x1xf32>
    %67 = vector.broadcast %66 : vector<8x1xf32> to vector<8x8xf32>
    %68 = arith.subf %64, %67 : vector<8x8xf32>
    %69 = math.exp %68 : vector<8x8xf32>
    %cst_34 = arith.constant dense<0.000000e+00> : vector<8xf32>
    %70 = vector.multi_reduction <add>, %69, %cst_34 [1] : vector<8x8xf32> to vector<8xf32>
    %71 = vector.shape_cast %70 : vector<8xf32> to vector<8x1xf32>
    %72 = tpu.reciprocal %71 {approx = true} : vector<8x1xf32> -> vector<8x1xf32>
    %73 = vector.broadcast %72 : vector<8x1xf32> to vector<8x8xf32>
    %74 = arith.mulf %69, %73 : vector<8x8xf32>
    %75 = arith.truncf %74 : vector<8x8xf32> to vector<8x8xbf16>
    %76 = vector.extract_strided_slice %45 {offsets = [0, 8], sizes = [8, 8], strides = [1, 1]} : vector<8x32xbf16> to vector<8x8xbf16>
    %cst_35 = arith.constant dense<0.000000e+00> : vector<8x8xf32>
    %77 = tpu.matmul %75, %76, %cst_35 {dimension_numbers = #tpu.dot_dimension_numbers<[1], [0], [0], [1], [0, 0, 1, 1], [], []>} : vector<8x8xbf16>, vector<8x8xbf16>, vector<8x8xf32> -> vector<8x8xf32>
    %78 = vector.extract_strided_slice %43 {offsets = [0, 16], sizes = [8, 8], strides = [1, 1]} : vector<8x32xbf16> to vector<8x8xbf16>
    %79 = vector.extract_strided_slice %44 {offsets = [0, 16], sizes = [8, 8], strides = [1, 1]} : vector<8x32xbf16> to vector<8x8xbf16>
    %cst_36 = arith.constant dense<0.000000e+00> : vector<8x8xf32>
    %80 = tpu.matmul %78, %79, %cst_36 {dimension_numbers = #tpu.dot_dimension_numbers<[1], [1], [0], [0], [0, 0, 1, 0], [], []>} : vector<8x8xbf16>, vector<8x8xbf16>, vector<8x8xf32> -> vector<8x8xf32>
    %cst_37 = arith.constant dense<0xFF800000> : vector<8xf32>
    %81 = vector.multi_reduction <maximumf>, %80, %cst_37 [1] : vector<8x8xf32> to vector<8xf32>
    %82 = vector.shape_cast %81 : vector<8xf32> to vector<8x1xf32>
    %83 = vector.broadcast %82 : vector<8x1xf32> to vector<8x8xf32>
    %84 = arith.subf %80, %83 : vector<8x8xf32>
    %85 = math.exp %84 : vector<8x8xf32>
    %cst_38 = arith.constant dense<0.000000e+00> : vector<8xf32>
    %86 = vector.multi_reduction <add>, %85, %cst_38 [1] : vector<8x8xf32> to vector<8xf32>
    %87 = vector.shape_cast %86 : vector<8xf32> to vector<8x1xf32>
    %88 = tpu.reciprocal %87 {approx = true} : vector<8x1xf32> -> vector<8x1xf32>
    %89 = vector.broadcast %88 : vector<8x1xf32> to vector<8x8xf32>
    %90 = arith.mulf %85, %89 : vector<8x8xf32>
    %91 = arith.truncf %90 : vector<8x8xf32> to vector<8x8xbf16>
    %92 = vector.extract_strided_slice %45 {offsets = [0, 16], sizes = [8, 8], strides = [1, 1]} : vector<8x32xbf16> to vector<8x8xbf16>
    %cst_39 = arith.constant dense<0.000000e+00> : vector<8x8xf32>
    %93 = tpu.matmul %91, %92, %cst_39 {dimension_numbers = #tpu.dot_dimension_numbers<[1], [0], [0], [1], [0, 0, 1, 1], [], []>} : vector<8x8xbf16>, vector<8x8xbf16>, vector<8x8xf32> -> vector<8x8xf32>
    %94 = vector.extract_strided_slice %43 {offsets = [0, 24], sizes = [8, 8], strides = [1, 1]} : vector<8x32xbf16> to vector<8x8xbf16>
    %95 = vector.extract_strided_slice %44 {offsets = [0, 24], sizes = [8, 8], strides = [1, 1]} : vector<8x32xbf16> to vector<8x8xbf16>
    %cst_40 = arith.constant dense<0.000000e+00> : vector<8x8xf32>
    %96 = tpu.matmul %94, %95, %cst_40 {dimension_numbers = #tpu.dot_dimension_numbers<[1], [1], [0], [0], [0, 0, 1, 0], [], []>} : vector<8x8xbf16>, vector<8x8xbf16>, vector<8x8xf32> -> vector<8x8xf32>
    %cst_41 = arith.constant dense<0xFF800000> : vector<8xf32>
    %97 = vector.multi_reduction <maximumf>, %96, %cst_41 [1] : vector<8x8xf32> to vector<8xf32>
    %98 = vector.shape_cast %97 : vector<8xf32> to vector<8x1xf32>
    %99 = vector.broadcast %98 : vector<8x1xf32> to vector<8x8xf32>
    %100 = arith.subf %96, %99 : vector<8x8xf32>
    %101 = math.exp %100 : vector<8x8xf32>
    %cst_42 = arith.constant dense<0.000000e+00> : vector<8xf32>
    %102 = vector.multi_reduction <add>, %101, %cst_42 [1] : vector<8x8xf32> to vector<8xf32>
    %103 = vector.shape_cast %102 : vector<8xf32> to vector<8x1xf32>
    %104 = tpu.reciprocal %103 {approx = true} : vector<8x1xf32> -> vector<8x1xf32>
    %105 = vector.broadcast %104 : vector<8x1xf32> to vector<8x8xf32>
    %106 = arith.mulf %101, %105 : vector<8x8xf32>
    %107 = arith.truncf %106 : vector<8x8xf32> to vector<8x8xbf16>
    %108 = vector.extract_strided_slice %45 {offsets = [0, 24], sizes = [8, 8], strides = [1, 1]} : vector<8x32xbf16> to vector<8x8xbf16>
    %cst_43 = arith.constant dense<0.000000e+00> : vector<8x8xf32>
    %109 = tpu.matmul %107, %108, %cst_43 {dimension_numbers = #tpu.dot_dimension_numbers<[1], [0], [0], [1], [0, 0, 1, 1], [], []>} : vector<8x8xbf16>, vector<8x8xbf16>, vector<8x8xf32> -> vector<8x8xf32>
    %110 = tpu.concatenate %61, %77, %93, %109 in 1 : vector<8x8xf32>, vector<8x8xf32>, vector<8x8xf32>, vector<8x8xf32> -> vector<8x32xf32>
    %111 = arith.truncf %110 : vector<8x32xf32> to vector<8x32xbf16>
    %c0_44 = arith.constant 0 : index
    %c0_45 = arith.constant 0 : index
    %c0_46 = arith.constant 0 : index
    %112 = vector.load %arg10[%c0_44, %c0_45, %c0_46] : memref<1x32x32xbf16, #tpu.memory_space<vmem>>, vector<1x32x32xbf16>
    %113 = vector.shape_cast %112 : vector<1x32x32xbf16> to vector<32x32xbf16>
    %cst_47 = arith.constant dense<0.000000e+00> : vector<8x32xf32>
    %114 = tpu.matmul %111, %113, %cst_47 {dimension_numbers = #tpu.dot_dimension_numbers<[1], [0], [0], [1], [0, 0, 1, 1], [], []>} : vector<8x32xbf16>, vector<32x32xbf16>, vector<8x32xf32> -> vector<8x32xf32>
    %115 = arith.addf %3, %114 : vector<8x32xf32>
    %c0_48 = arith.constant 0 : index
    %c0_49 = arith.constant 0 : index
    %c0_50 = arith.constant 0 : index
    %116 = vector.load %arg11[%c0_48, %c0_49, %c0_50] : memref<1x1x32xf32, #tpu.memory_space<vmem>>, vector<1x1x32xf32>
    %117 = vector.shape_cast %116 : vector<1x1x32xf32> to vector<1x32xf32>
    %118 = vector.broadcast %117 : vector<1x32xf32> to vector<8x32xf32>
    %119 = arith.addf %115, %118 : vector<8x32xf32>
    %c0_51 = arith.constant 0 : index
    %c0_52 = arith.constant 0 : index
    %c0_53 = arith.constant 0 : index
    %120 = vector.load %arg12[%c0_51, %c0_52, %c0_53] : memref<1x1x32xf32, #tpu.memory_space<vmem>>, vector<1x1x32xf32>
    %121 = vector.shape_cast %120 : vector<1x1x32xf32> to vector<1x32xf32>
    %122 = arith.mulf %119, %119 : vector<8x32xf32>
    %cst_54 = arith.constant dense<0.000000e+00> : vector<8xf32>
    %123 = vector.multi_reduction <add>, %122, %cst_54 [1] : vector<8x32xf32> to vector<8xf32>
    %124 = vector.shape_cast %123 : vector<8xf32> to vector<8x1xf32>
    %cst_55 = arith.constant 3.200000e+01 : f32
    %125 = vector.broadcast %cst_55 : f32 to vector<8x1xf32>
    %126 = arith.divf %124, %125 : vector<8x1xf32>
    %cst_56 = arith.constant 1.000000e-16 : f32
    %127 = vector.broadcast %cst_56 : f32 to vector<8x1xf32>
    %128 = arith.maximumf %126, %127 : vector<8x1xf32>
    %129 = math.rsqrt %128 : vector<8x1xf32>
    %130 = vector.broadcast %129 : vector<8x1xf32> to vector<8x32xf32>
    %131 = arith.mulf %119, %130 : vector<8x32xf32>
    %132 = vector.broadcast %121 : vector<1x32xf32> to vector<8x32xf32>
    %133 = arith.mulf %131, %132 : vector<8x32xf32>
    %134 = arith.truncf %133 : vector<8x32xf32> to vector<8x32xbf16>
    %c0_57 = arith.constant 0 : index
    %c0_58 = arith.constant 0 : index
    %c0_59 = arith.constant 0 : index
    %135 = vector.load %arg13[%c0_57, %c0_58, %c0_59] : memref<1x32x32xbf16, #tpu.memory_space<vmem>>, vector<1x32x32xbf16>
    %136 = vector.shape_cast %135 : vector<1x32x32xbf16> to vector<32x32xbf16>
    %cst_60 = arith.constant dense<0.000000e+00> : vector<8x32xf32>
    %137 = tpu.matmul %134, %136, %cst_60 {dimension_numbers = #tpu.dot_dimension_numbers<[1], [0], [0], [1], [0, 0, 1, 1], [], []>} : vector<8x32xbf16>, vector<32x32xbf16>, vector<8x32xf32> -> vector<8x32xf32>
    %c0_61 = arith.constant 0 : index
    %c0_62 = arith.constant 0 : index
    %c0_63 = arith.constant 0 : index
    %138 = vector.load %arg14[%c0_61, %c0_62, %c0_63] : memref<1x1x32xf32, #tpu.memory_space<vmem>>, vector<1x1x32xf32>
    %139 = vector.shape_cast %138 : vector<1x1x32xf32> to vector<1x32xf32>
    %140 = vector.broadcast %139 : vector<1x32xf32> to vector<8x32xf32>
    %141 = arith.addf %137, %140 : vector<8x32xf32>
    %c0_64 = arith.constant 0 : index
    %c0_65 = arith.constant 0 : index
    %c0_66 = arith.constant 0 : index
    %142 = vector.load %arg15[%c0_64, %c0_65, %c0_66] : memref<1x32x32xbf16, #tpu.memory_space<vmem>>, vector<1x32x32xbf16>
    %143 = vector.shape_cast %142 : vector<1x32x32xbf16> to vector<32x32xbf16>
    %cst_67 = arith.constant dense<0.000000e+00> : vector<8x32xf32>
    %144 = tpu.matmul %134, %143, %cst_67 {dimension_numbers = #tpu.dot_dimension_numbers<[1], [0], [0], [1], [0, 0, 1, 1], [], []>} : vector<8x32xbf16>, vector<32x32xbf16>, vector<8x32xf32> -> vector<8x32xf32>
    %c0_68 = arith.constant 0 : index
    %c0_69 = arith.constant 0 : index
    %c0_70 = arith.constant 0 : index
    %145 = vector.load %arg16[%c0_68, %c0_69, %c0_70] : memref<1x1x32xf32, #tpu.memory_space<vmem>>, vector<1x1x32xf32>
    %146 = vector.shape_cast %145 : vector<1x1x32xf32> to vector<1x32xf32>
    %147 = vector.broadcast %146 : vector<1x32xf32> to vector<8x32xf32>
    %148 = arith.addf %144, %147 : vector<8x32xf32>
    %149 = arith.mulf %148, %148 : vector<8x32xf32>
    %150 = arith.mulf %148, %149 : vector<8x32xf32>
    %cst_71 = arith.constant 4.471500e-02 : f32
    %151 = vector.broadcast %cst_71 : f32 to vector<8x32xf32>
    %152 = arith.mulf %151, %150 : vector<8x32xf32>
    %153 = arith.addf %148, %152 : vector<8x32xf32>
    %cst_72 = arith.constant 0.797884583 : f32
    %154 = vector.broadcast %cst_72 : f32 to vector<8x32xf32>
    %155 = arith.mulf %154, %153 : vector<8x32xf32>
    %156 = math.tanh %155 : vector<8x32xf32>
    %cst_73 = arith.constant 1.000000e+00 : f32
    %157 = vector.broadcast %cst_73 : f32 to vector<8x32xf32>
    %158 = arith.addf %157, %156 : vector<8x32xf32>
    %cst_74 = arith.constant 5.000000e-01 : f32
    %159 = vector.broadcast %cst_74 : f32 to vector<8x32xf32>
    %160 = arith.mulf %159, %158 : vector<8x32xf32>
    %161 = arith.mulf %148, %160 : vector<8x32xf32>
    %162 = arith.mulf %141, %161 : vector<8x32xf32>
    %163 = arith.truncf %162 : vector<8x32xf32> to vector<8x32xbf16>
    %c0_75 = arith.constant 0 : index
    %c0_76 = arith.constant 0 : index
    %c0_77 = arith.constant 0 : index
    %164 = vector.load %arg17[%c0_75, %c0_76, %c0_77] : memref<1x32x32xbf16, #tpu.memory_space<vmem>>, vector<1x32x32xbf16>
    %165 = vector.shape_cast %164 : vector<1x32x32xbf16> to vector<32x32xbf16>
    %cst_78 = arith.constant dense<0.000000e+00> : vector<8x32xf32>
    %166 = tpu.matmul %163, %165, %cst_78 {dimension_numbers = #tpu.dot_dimension_numbers<[1], [0], [0], [1], [0, 0, 1, 1], [], []>} : vector<8x32xbf16>, vector<32x32xbf16>, vector<8x32xf32> -> vector<8x32xf32>
    %167 = arith.addf %119, %166 : vector<8x32xf32>
    %c0_79 = arith.constant 0 : index
    %c0_80 = arith.constant 0 : index
    %c0_81 = arith.constant 0 : index
    %168 = vector.load %arg18[%c0_79, %c0_80, %c0_81] : memref<1x1x32xf32, #tpu.memory_space<vmem>>, vector<1x1x32xf32>
    %169 = vector.shape_cast %168 : vector<1x1x32xf32> to vector<1x32xf32>
    %170 = vector.broadcast %169 : vector<1x32xf32> to vector<8x32xf32>
    %171 = arith.addf %167, %170 : vector<8x32xf32>
    %c0_82 = arith.constant 0 : index
    %c0_83 = arith.constant 0 : index
    %172 = vector.load %arg20[%c0_82, %c0_83] : memref<8x32xf32, #tpu.memory_space<vmem>>, vector<8x32xf32>
    tpu.vector_store %arg20[%c0_82, %c0_83], %171 {strides = array<i32>} : memref<8x32xf32, #tpu.memory_space<vmem>>, vector<8x32xf32>,
    %c1_i32 = arith.constant 1 : i32
    %173 = arith.cmpi eq, %arg1, %c1_i32 : i32
    %174 = arith.extui %173 : i1 to i32
    %c0_i32_84 = arith.constant 0 : i32
    %175 = arith.cmpi ne, %174, %c0_i32_84 : i32
    scf.if %175 {
      %c0_85 = arith.constant 0 : index
      %c0_86 = arith.constant 0 : index
      %c0_87 = arith.constant 0 : index
      %176 = vector.load %arg19[%c0_85, %c0_86, %c0_87] : memref<1x8x32xf32, #tpu.memory_space<vmem>>, vector<1x8x32xf32>
      %177 = vector.shape_cast %176 : vector<1x8x32xf32> to vector<8x32xf32>
      %178 = vector.shape_cast %171 : vector<8x32xf32> to vector<1x8x32xf32>
      tpu.vector_store %arg19[%c0_85, %c0_86, %c0_87], %178 {strides = array<i32>} : memref<1x8x32xf32, #tpu.memory_space<vmem>>, vector<1x8x32xf32>,
    } else {
    }
    return
  }
  func.func @transform_0(%arg0: i32, %arg1: i32) -> (i32, i32, i32) {
    %c0_i32 = arith.constant 0 : i32
    %c0_i32_0 = arith.constant 0 : i32
    %c0_i32_1 = arith.constant 0 : i32
    return %arg0, %c0_i32, %c0_i32_0 : i32, i32, i32
  }
  func.func @transform_1(%arg0: i32, %arg1: i32) -> (i32, i32) {
    %c0_i32 = arith.constant 0 : i32
    %c0_i32_0 = arith.constant 0 : i32
    %c0_i32_1 = arith.constant 0 : i32
    return %c0_i32, %c0_i32_0 : i32, i32
  }
  func.func @transform_2(%arg0: i32, %arg1: i32) -> (i32, i32) {
    %c0_i32 = arith.constant 0 : i32
    %c0_i32_0 = arith.constant 0 : i32
    %c0_i32_1 = arith.constant 0 : i32
    return %c0_i32, %c0_i32_0 : i32, i32
  }
  func.func @transform_3(%arg0: i32, %arg1: i32) -> (i32, i32) {
    %c0_i32 = arith.constant 0 : i32
    %c0_i32_0 = arith.constant 0 : i32
    %c0_i32_1 = arith.constant 0 : i32
    return %c0_i32, %c0_i32_0 : i32, i32
  }
  func.func @transform_4(%arg0: i32, %arg1: i32) -> (i32, i32, i32) {
    %c0_i32 = arith.constant 0 : i32
    %c0_i32_0 = arith.constant 0 : i32
    %c0_i32_1 = arith.constant 0 : i32
    return %arg1, %c0_i32, %c0_i32_0 : i32, i32, i32
  }
  func.func @transform_5(%arg0: i32, %arg1: i32) -> (i32, i32, i32) {
    %c0_i32 = arith.constant 0 : i32
    %c0_i32_0 = arith.constant 0 : i32
    %c0_i32_1 = arith.constant 0 : i32
    return %arg1, %c0_i32, %c0_i32_0 : i32, i32, i32
  }
  func.func @transform_6(%arg0: i32, %arg1: i32) -> (i32, i32, i32) {
    %c0_i32 = arith.constant 0 : i32
    %c0_i32_0 = arith.constant 0 : i32
    %c0_i32_1 = arith.constant 0 : i32
    return %arg1, %c0_i32, %c0_i32_0 : i32, i32, i32
  }
  func.func @transform_7(%arg0: i32, %arg1: i32) -> (i32, i32, i32) {
    %c0_i32 = arith.constant 0 : i32
    %c0_i32_0 = arith.constant 0 : i32
    %c0_i32_1 = arith.constant 0 : i32
    return %arg1, %c0_i32, %c0_i32_0 : i32, i32, i32
  }
  func.func @transform_8(%arg0: i32, %arg1: i32) -> (i32, i32, i32) {
    %c0_i32 = arith.constant 0 : i32
    %c0_i32_0 = arith.constant 0 : i32
    %c0_i32_1 = arith.constant 0 : i32
    return %arg1, %c0_i32, %c0_i32_0 : i32, i32, i32
  }
  func.func @transform_9(%arg0: i32, %arg1: i32) -> (i32, i32, i32) {
    %c0_i32 = arith.constant 0 : i32
    %c0_i32_0 = arith.constant 0 : i32
    %c0_i32_1 = arith.constant 0 : i32
    return %arg1, %c0_i32, %c0_i32_0 : i32, i32, i32
  }
  func.func @transform_10(%arg0: i32, %arg1: i32) -> (i32, i32, i32) {
    %c0_i32 = arith.constant 0 : i32
    %c0_i32_0 = arith.constant 0 : i32
    %c0_i32_1 = arith.constant 0 : i32
    return %arg1, %c0_i32, %c0_i32_0 : i32, i32, i32
  }
  func.func @transform_11(%arg0: i32, %arg1: i32) -> (i32, i32, i32) {
    %c0_i32 = arith.constant 0 : i32
    %c0_i32_0 = arith.constant 0 : i32
    %c0_i32_1 = arith.constant 0 : i32
    return %arg1, %c0_i32, %c0_i32_0 : i32, i32, i32
  }
  func.func @transform_12(%arg0: i32, %arg1: i32) -> (i32, i32, i32) {
    %c0_i32 = arith.constant 0 : i32
    %c0_i32_0 = arith.constant 0 : i32
    %c0_i32_1 = arith.constant 0 : i32
    return %arg1, %c0_i32, %c0_i32_0 : i32, i32, i32
  }
  func.func @transform_13(%arg0: i32, %arg1: i32) -> (i32, i32, i32) {
    %c0_i32 = arith.constant 0 : i32
    %c0_i32_0 = arith.constant 0 : i32
    %c0_i32_1 = arith.constant 0 : i32
    return %arg1, %c0_i32, %c0_i32_0 : i32, i32, i32
  }
  func.func @transform_14(%arg0: i32, %arg1: i32) -> (i32, i32, i32) {
    %c0_i32 = arith.constant 0 : i32
    %c0_i32_0 = arith.constant 0 : i32
    %c0_i32_1 = arith.constant 0 : i32
    return %arg1, %c0_i32, %c0_i32_0 : i32, i32, i32
  }
  func.func @transform_15(%arg0: i32, %arg1: i32) -> (i32, i32, i32) {
    %c0_i32 = arith.constant 0 : i32
    %c0_i32_0 = arith.constant 0 : i32
    %c0_i32_1 = arith.constant 0 : i32
    return %arg1, %c0_i32, %c0_i32_0 : i32, i32, i32
  }
  func.func @transform_16(%arg0: i32, %arg1: i32) -> (i32, i32, i32) {
    %c0_i32 = arith.constant 0 : i32
    %c0_i32_0 = arith.constant 0 : i32
    %c0_i32_1 = arith.constant 0 : i32
    return %arg1, %c0_i32, %c0_i32_0 : i32, i32, i32
  }
  func.func @transform_17(%arg0: i32, %arg1: i32) -> (i32, i32, i32) {
    %c0_i32 = arith.constant 0 : i32
    %c0_i32_0 = arith.constant 0 : i32
    %c0_i32_1 = arith.constant 0 : i32
    return %arg0, %c0_i32, %c0_i32_0 : i32, i32, i32
  }
}

module attributes {stable_mosaic.version = 11 : i64} {
  func.func @_head_kernel(%arg0: i32, %arg1: memref<1x8x32xf32, #tpu.memory_space<vmem>>, %arg2: memref<1x32xf32, #tpu.memory_space<vmem>>, %arg3: memref<1x32xf32, #tpu.memory_space<vmem>>, %arg4: memref<32x64xbf16, #tpu.memory_space<vmem>>, %arg5: memref<1x64xf32, #tpu.memory_space<vmem>>, %arg6: memref<1x64xf32, #tpu.memory_space<vmem>>, %arg7: memref<1x64xf32, #tpu.memory_space<vmem>>, %arg8: memref<64x64xf32, #tpu.memory_space<vmem>>, %arg9: memref<64x64xbf16, #tpu.memory_space<vmem>>, %arg10: memref<1x64xf32, #tpu.memory_space<vmem>>, %arg11: memref<64x64xbf16, #tpu.memory_space<vmem>>, %arg12: memref<1x64xf32, #tpu.memory_space<vmem>>, %arg13: memref<64x64xbf16, #tpu.memory_space<vmem>>, %arg14: memref<1x64xf32, #tpu.memory_space<vmem>>, %arg15: memref<64x64xbf16, #tpu.memory_space<vmem>>, %arg16: memref<1x64xf32, #tpu.memory_space<vmem>>, %arg17: memref<64x64xbf16, #tpu.memory_space<vmem>>, %arg18: memref<1x64xf32, #tpu.memory_space<vmem>>, %arg19: memref<1x1x64xf32, #tpu.memory_space<vmem>>) attributes {dimension_semantics = [#tpu.dimension_semantics<parallel>], iteration_bounds = array<i64: 2>, scalar_prefetch = 0 : i64, scratch_operands = 0 : i64, tpu.core_type = #tpu.core_type<tc>, window_params = [{transform_indices = @transform_0, window_bounds = array<i64: 1, 8, 32>}, {pipeline_mode = #tpu.pipeline_mode<synchronous>, transform_indices = @transform_1, window_bounds = array<i64: 1, 32>}, {pipeline_mode = #tpu.pipeline_mode<synchronous>, transform_indices = @transform_2, window_bounds = array<i64: 1, 32>}, {pipeline_mode = #tpu.pipeline_mode<synchronous>, transform_indices = @transform_3, window_bounds = array<i64: 32, 64>}, {pipeline_mode = #tpu.pipeline_mode<synchronous>, transform_indices = @transform_4, window_bounds = array<i64: 1, 64>}, {pipeline_mode = #tpu.pipeline_mode<synchronous>, transform_indices = @transform_5, window_bounds = array<i64: 1, 64>}, {pipeline_mode = #tpu.pipeline_mode<synchronous>, transform_indices = @transform_6, window_bounds = array<i64: 1, 64>}, {pipeline_mode = #tpu.pipeline_mode<synchronous>, transform_indices = @transform_7, window_bounds = array<i64: 64, 64>}, {pipeline_mode = #tpu.pipeline_mode<synchronous>, transform_indices = @transform_8, window_bounds = array<i64: 64, 64>}, {pipeline_mode = #tpu.pipeline_mode<synchronous>, transform_indices = @transform_9, window_bounds = array<i64: 1, 64>}, {pipeline_mode = #tpu.pipeline_mode<synchronous>, transform_indices = @transform_10, window_bounds = array<i64: 64, 64>}, {pipeline_mode = #tpu.pipeline_mode<synchronous>, transform_indices = @transform_11, window_bounds = array<i64: 1, 64>}, {pipeline_mode = #tpu.pipeline_mode<synchronous>, transform_indices = @transform_12, window_bounds = array<i64: 64, 64>}, {pipeline_mode = #tpu.pipeline_mode<synchronous>, transform_indices = @transform_13, window_bounds = array<i64: 1, 64>}, {pipeline_mode = #tpu.pipeline_mode<synchronous>, transform_indices = @transform_14, window_bounds = array<i64: 64, 64>}, {pipeline_mode = #tpu.pipeline_mode<synchronous>, transform_indices = @transform_15, window_bounds = array<i64: 1, 64>}, {pipeline_mode = #tpu.pipeline_mode<synchronous>, transform_indices = @transform_16, window_bounds = array<i64: 64, 64>}, {pipeline_mode = #tpu.pipeline_mode<synchronous>, transform_indices = @transform_17, window_bounds = array<i64: 1, 64>}, {transform_indices = @transform_18, window_bounds = array<i64: 1, 1, 64>}]} {
    %c0 = arith.constant 0 : index
    %c0_0 = arith.constant 0 : index
    %c0_1 = arith.constant 0 : index
    %0 = vector.load %arg1[%c0, %c0_0, %c0_1] : memref<1x8x32xf32, #tpu.memory_space<vmem>>, vector<1x8x32xf32>
    %1 = vector.shape_cast %0 : vector<1x8x32xf32> to vector<8x32xf32>
    %cst = arith.constant dense<0.000000e+00> : vector<8xf32>
    %2 = vector.multi_reduction <add>, %1, %cst [1] : vector<8x32xf32> to vector<8xf32>
    %3 = vector.shape_cast %2 : vector<8xf32> to vector<8x1xf32>
    %cst_2 = arith.constant 3.200000e+01 : f32
    %4 = vector.broadcast %cst_2 : f32 to vector<8x1xf32>
    %5 = arith.divf %3, %4 : vector<8x1xf32>
    %6 = vector.broadcast %5 : vector<8x1xf32> to vector<8x32xf32>
    %7 = arith.subf %1, %6 : vector<8x32xf32>
    %8 = arith.mulf %7, %7 : vector<8x32xf32>
    %cst_3 = arith.constant dense<0.000000e+00> : vector<8xf32>
    %9 = vector.multi_reduction <add>, %8, %cst_3 [1] : vector<8x32xf32> to vector<8xf32>
    %10 = vector.shape_cast %9 : vector<8xf32> to vector<8x1xf32>
    %cst_4 = arith.constant 3.200000e+01 : f32
    %11 = vector.broadcast %cst_4 : f32 to vector<8x1xf32>
    %12 = arith.divf %10, %11 : vector<8x1xf32>
    %13 = vector.broadcast %5 : vector<8x1xf32> to vector<8x32xf32>
    %14 = arith.subf %1, %13 : vector<8x32xf32>
    %cst_5 = arith.constant 9.99999974E-6 : f32
    %15 = vector.broadcast %cst_5 : f32 to vector<8x1xf32>
    %16 = arith.addf %12, %15 : vector<8x1xf32>
    %17 = math.rsqrt %16 : vector<8x1xf32>
    %18 = vector.broadcast %17 : vector<8x1xf32> to vector<8x32xf32>
    %19 = arith.mulf %14, %18 : vector<8x32xf32>
    %c0_6 = arith.constant 0 : index
    %c0_7 = arith.constant 0 : index
    %20 = vector.load %arg2[%c0_6, %c0_7] : memref<1x32xf32, #tpu.memory_space<vmem>>, vector<1x32xf32>
    %21 = vector.broadcast %20 : vector<1x32xf32> to vector<8x32xf32>
    %22 = arith.mulf %19, %21 : vector<8x32xf32>
    %c0_8 = arith.constant 0 : index
    %c0_9 = arith.constant 0 : index
    %23 = vector.load %arg3[%c0_8, %c0_9] : memref<1x32xf32, #tpu.memory_space<vmem>>, vector<1x32xf32>
    %24 = vector.broadcast %23 : vector<1x32xf32> to vector<8x32xf32>
    %25 = arith.addf %22, %24 : vector<8x32xf32>
    %26 = arith.truncf %25 : vector<8x32xf32> to vector<8x32xbf16>
    %c0_10 = arith.constant 0 : index
    %c0_11 = arith.constant 0 : index
    %27 = vector.load %arg4[%c0_10, %c0_11] : memref<32x64xbf16, #tpu.memory_space<vmem>>, vector<32x64xbf16>
    %cst_12 = arith.constant dense<0.000000e+00> : vector<8x64xf32>
    %28 = tpu.matmul %26, %27, %cst_12 {dimension_numbers = #tpu.dot_dimension_numbers<[1], [0], [0], [1], [0, 0, 1, 1], [], []>} : vector<8x32xbf16>, vector<32x64xbf16>, vector<8x64xf32> -> vector<8x64xf32>
    %c0_13 = arith.constant 0 : index
    %c0_14 = arith.constant 0 : index
    %29 = vector.load %arg5[%c0_13, %c0_14] : memref<1x64xf32, #tpu.memory_space<vmem>>, vector<1x64xf32>
    %30 = vector.broadcast %29 : vector<1x64xf32> to vector<8x64xf32>
    %31 = arith.addf %28, %30 : vector<8x64xf32>
    %cst_15 = arith.constant dense<0.000000e+00> : vector<64xf32>
    %32 = vector.multi_reduction <add>, %31, %cst_15 [0] : vector<8x64xf32> to vector<64xf32>
    %33 = vector.shape_cast %32 : vector<64xf32> to vector<1x64xf32>
    %cst_16 = arith.constant 8.000000e+00 : f32
    %34 = vector.broadcast %cst_16 : f32 to vector<1x64xf32>
    %35 = arith.divf %33, %34 : vector<1x64xf32>
    %36 = arith.mulf %31, %31 : vector<8x64xf32>
    %cst_17 = arith.constant dense<0.000000e+00> : vector<64xf32>
    %37 = vector.multi_reduction <add>, %36, %cst_17 [0] : vector<8x64xf32> to vector<64xf32>
    %38 = vector.shape_cast %37 : vector<64xf32> to vector<1x64xf32>
    %cst_18 = arith.constant 8.000000e+00 : f32
    %39 = vector.broadcast %cst_18 : f32 to vector<1x64xf32>
    %40 = arith.divf %38, %39 : vector<1x64xf32>
    %c0_19 = arith.constant 0 : index
    %c0_20 = arith.constant 0 : index
    %41 = vector.load %arg8[%c0_19, %c0_20] : memref<64x64xf32, #tpu.memory_space<vmem>>, vector<64x64xf32>
    %cst_21 = arith.constant dense<0.000000e+00> : vector<1x64xf32>
    %42 = tpu.matmul %35, %41, %cst_21 {dimension_numbers = #tpu.dot_dimension_numbers<[1], [0], [0], [1], [0, 0, 1, 1], [], []>} : vector<1x64xf32>, vector<64x64xf32>, vector<1x64xf32> -> vector<1x64xf32>
    %c0_22 = arith.constant 0 : index
    %c0_23 = arith.constant 0 : index
    %43 = vector.load %arg8[%c0_22, %c0_23] : memref<64x64xf32, #tpu.memory_space<vmem>>, vector<64x64xf32>
    %cst_24 = arith.constant dense<0.000000e+00> : vector<1x64xf32>
    %44 = tpu.matmul %40, %43, %cst_24 {dimension_numbers = #tpu.dot_dimension_numbers<[1], [0], [0], [1], [0, 0, 1, 1], [], []>} : vector<1x64xf32>, vector<64x64xf32>, vector<1x64xf32> -> vector<1x64xf32>
    %45 = arith.mulf %42, %42 : vector<1x64xf32>
    %46 = arith.subf %44, %45 : vector<1x64xf32>
    %cst_25 = arith.constant 0.000000e+00 : f32
    %47 = vector.broadcast %cst_25 : f32 to vector<1x64xf32>
    %48 = arith.maximumf %46, %47 : vector<1x64xf32>
    %49 = vector.broadcast %42 : vector<1x64xf32> to vector<8x64xf32>
    %50 = arith.subf %31, %49 : vector<8x64xf32>
    %cst_26 = arith.constant 9.99999974E-6 : f32
    %51 = vector.broadcast %cst_26 : f32 to vector<1x64xf32>
    %52 = arith.addf %48, %51 : vector<1x64xf32>
    %53 = math.rsqrt %52 : vector<1x64xf32>
    %54 = vector.broadcast %53 : vector<1x64xf32> to vector<8x64xf32>
    %55 = arith.mulf %50, %54 : vector<8x64xf32>
    %c0_27 = arith.constant 0 : index
    %c0_28 = arith.constant 0 : index
    %56 = vector.load %arg6[%c0_27, %c0_28] : memref<1x64xf32, #tpu.memory_space<vmem>>, vector<1x64xf32>
    %57 = vector.broadcast %56 : vector<1x64xf32> to vector<8x64xf32>
    %58 = arith.mulf %55, %57 : vector<8x64xf32>
    %c0_29 = arith.constant 0 : index
    %c0_30 = arith.constant 0 : index
    %59 = vector.load %arg7[%c0_29, %c0_30] : memref<1x64xf32, #tpu.memory_space<vmem>>, vector<1x64xf32>
    %60 = vector.broadcast %59 : vector<1x64xf32> to vector<8x64xf32>
    %61 = arith.addf %58, %60 : vector<8x64xf32>
    %62 = arith.truncf %61 : vector<8x64xf32> to vector<8x64xbf16>
    %c0_31 = arith.constant 0 : index
    %c0_32 = arith.constant 0 : index
    %63 = vector.load %arg9[%c0_31, %c0_32] : memref<64x64xbf16, #tpu.memory_space<vmem>>, vector<64x64xbf16>
    %cst_33 = arith.constant dense<0.000000e+00> : vector<8x64xf32>
    %64 = tpu.matmul %62, %63, %cst_33 {dimension_numbers = #tpu.dot_dimension_numbers<[1], [0], [0], [1], [0, 0, 1, 1], [], []>} : vector<8x64xbf16>, vector<64x64xbf16>, vector<8x64xf32> -> vector<8x64xf32>
    %c0_34 = arith.constant 0 : index
    %c0_35 = arith.constant 0 : index
    %65 = vector.load %arg10[%c0_34, %c0_35] : memref<1x64xf32, #tpu.memory_space<vmem>>, vector<1x64xf32>
    %66 = vector.broadcast %65 : vector<1x64xf32> to vector<8x64xf32>
    %67 = arith.addf %64, %66 : vector<8x64xf32>
    %c0_36 = arith.constant 0 : index
    %c0_37 = arith.constant 0 : index
    %68 = vector.load %arg11[%c0_36, %c0_37] : memref<64x64xbf16, #tpu.memory_space<vmem>>, vector<64x64xbf16>
    %cst_38 = arith.constant dense<0.000000e+00> : vector<8x64xf32>
    %69 = tpu.matmul %62, %68, %cst_38 {dimension_numbers = #tpu.dot_dimension_numbers<[1], [0], [0], [1], [0, 0, 1, 1], [], []>} : vector<8x64xbf16>, vector<64x64xbf16>, vector<8x64xf32> -> vector<8x64xf32>
    %c0_39 = arith.constant 0 : index
    %c0_40 = arith.constant 0 : index
    %70 = vector.load %arg12[%c0_39, %c0_40] : memref<1x64xf32, #tpu.memory_space<vmem>>, vector<1x64xf32>
    %71 = vector.broadcast %70 : vector<1x64xf32> to vector<8x64xf32>
    %72 = arith.addf %69, %71 : vector<8x64xf32>
    %c0_41 = arith.constant 0 : index
    %c0_42 = arith.constant 0 : index
    %73 = vector.load %arg13[%c0_41, %c0_42] : memref<64x64xbf16, #tpu.memory_space<vmem>>, vector<64x64xbf16>
    %cst_43 = arith.constant dense<0.000000e+00> : vector<8x64xf32>
    %74 = tpu.matmul %62, %73, %cst_43 {dimension_numbers = #tpu.dot_dimension_numbers<[1], [0], [0], [1], [0, 0, 1, 1], [], []>} : vector<8x64xbf16>, vector<64x64xbf16>, vector<8x64xf32> -> vector<8x64xf32>
    %c0_44 = arith.constant 0 : index
    %c0_45 = arith.constant 0 : index
    %75 = vector.load %arg14[%c0_44, %c0_45] : memref<1x64xf32, #tpu.memory_space<vmem>>, vector<1x64xf32>
    %76 = vector.broadcast %75 : vector<1x64xf32> to vector<8x64xf32>
    %77 = arith.addf %74, %76 : vector<8x64xf32>
    %cst_46 = arith.constant 2.500000e-01 : f32
    %78 = vector.broadcast %cst_46 : f32 to vector<8x64xf32>
    %79 = arith.mulf %67, %78 : vector<8x64xf32>
    %80 = arith.truncf %79 : vector<8x64xf32> to vector<8x64xbf16>
    %81 = arith.truncf %72 : vector<8x64xf32> to vector<8x64xbf16>
    %82 = arith.truncf %77 : vector<8x64xf32> to vector<8x64xbf16>
    %83 = vector.extract_strided_slice %80 {offsets = [0, 0], sizes = [8, 16], strides = [1, 1]} : vector<8x64xbf16> to vector<8x16xbf16>
    %84 = vector.extract_strided_slice %81 {offsets = [0, 0], sizes = [8, 16], strides = [1, 1]} : vector<8x64xbf16> to vector<8x16xbf16>
    %cst_47 = arith.constant dense<0.000000e+00> : vector<8x8xf32>
    %85 = tpu.matmul %83, %84, %cst_47 {dimension_numbers = #tpu.dot_dimension_numbers<[1], [1], [0], [0], [0, 0, 1, 0], [], []>} : vector<8x16xbf16>, vector<8x16xbf16>, vector<8x8xf32> -> vector<8x8xf32>
    %cst_48 = arith.constant dense<0xFF800000> : vector<8xf32>
    %86 = vector.multi_reduction <maximumf>, %85, %cst_48 [1] : vector<8x8xf32> to vector<8xf32>
    %87 = vector.shape_cast %86 : vector<8xf32> to vector<8x1xf32>
    %88 = vector.broadcast %87 : vector<8x1xf32> to vector<8x8xf32>
    %89 = arith.subf %85, %88 : vector<8x8xf32>
    %90 = math.exp %89 : vector<8x8xf32>
    %cst_49 = arith.constant dense<0.000000e+00> : vector<8xf32>
    %91 = vector.multi_reduction <add>, %90, %cst_49 [1] : vector<8x8xf32> to vector<8xf32>
    %92 = vector.shape_cast %91 : vector<8xf32> to vector<8x1xf32>
    %93 = tpu.reciprocal %92 {approx = true} : vector<8x1xf32> -> vector<8x1xf32>
    %94 = vector.broadcast %93 : vector<8x1xf32> to vector<8x8xf32>
    %95 = arith.mulf %90, %94 : vector<8x8xf32>
    %96 = arith.truncf %95 : vector<8x8xf32> to vector<8x8xbf16>
    %97 = vector.extract_strided_slice %82 {offsets = [0, 0], sizes = [8, 16], strides = [1, 1]} : vector<8x64xbf16> to vector<8x16xbf16>
    %cst_50 = arith.constant dense<0.000000e+00> : vector<8x16xf32>
    %98 = tpu.matmul %96, %97, %cst_50 {dimension_numbers = #tpu.dot_dimension_numbers<[1], [0], [0], [1], [0, 0, 1, 1], [], []>} : vector<8x8xbf16>, vector<8x16xbf16>, vector<8x16xf32> -> vector<8x16xf32>
    %99 = vector.extract_strided_slice %80 {offsets = [0, 16], sizes = [8, 16], strides = [1, 1]} : vector<8x64xbf16> to vector<8x16xbf16>
    %100 = vector.extract_strided_slice %81 {offsets = [0, 16], sizes = [8, 16], strides = [1, 1]} : vector<8x64xbf16> to vector<8x16xbf16>
    %cst_51 = arith.constant dense<0.000000e+00> : vector<8x8xf32>
    %101 = tpu.matmul %99, %100, %cst_51 {dimension_numbers = #tpu.dot_dimension_numbers<[1], [1], [0], [0], [0, 0, 1, 0], [], []>} : vector<8x16xbf16>, vector<8x16xbf16>, vector<8x8xf32> -> vector<8x8xf32>
    %cst_52 = arith.constant dense<0xFF800000> : vector<8xf32>
    %102 = vector.multi_reduction <maximumf>, %101, %cst_52 [1] : vector<8x8xf32> to vector<8xf32>
    %103 = vector.shape_cast %102 : vector<8xf32> to vector<8x1xf32>
    %104 = vector.broadcast %103 : vector<8x1xf32> to vector<8x8xf32>
    %105 = arith.subf %101, %104 : vector<8x8xf32>
    %106 = math.exp %105 : vector<8x8xf32>
    %cst_53 = arith.constant dense<0.000000e+00> : vector<8xf32>
    %107 = vector.multi_reduction <add>, %106, %cst_53 [1] : vector<8x8xf32> to vector<8xf32>
    %108 = vector.shape_cast %107 : vector<8xf32> to vector<8x1xf32>
    %109 = tpu.reciprocal %108 {approx = true} : vector<8x1xf32> -> vector<8x1xf32>
    %110 = vector.broadcast %109 : vector<8x1xf32> to vector<8x8xf32>
    %111 = arith.mulf %106, %110 : vector<8x8xf32>
    %112 = arith.truncf %111 : vector<8x8xf32> to vector<8x8xbf16>
    %113 = vector.extract_strided_slice %82 {offsets = [0, 16], sizes = [8, 16], strides = [1, 1]} : vector<8x64xbf16> to vector<8x16xbf16>
    %cst_54 = arith.constant dense<0.000000e+00> : vector<8x16xf32>
    %114 = tpu.matmul %112, %113, %cst_54 {dimension_numbers = #tpu.dot_dimension_numbers<[1], [0], [0], [1], [0, 0, 1, 1], [], []>} : vector<8x8xbf16>, vector<8x16xbf16>, vector<8x16xf32> -> vector<8x16xf32>
    %115 = vector.extract_strided_slice %80 {offsets = [0, 32], sizes = [8, 16], strides = [1, 1]} : vector<8x64xbf16> to vector<8x16xbf16>
    %116 = vector.extract_strided_slice %81 {offsets = [0, 32], sizes = [8, 16], strides = [1, 1]} : vector<8x64xbf16> to vector<8x16xbf16>
    %cst_55 = arith.constant dense<0.000000e+00> : vector<8x8xf32>
    %117 = tpu.matmul %115, %116, %cst_55 {dimension_numbers = #tpu.dot_dimension_numbers<[1], [1], [0], [0], [0, 0, 1, 0], [], []>} : vector<8x16xbf16>, vector<8x16xbf16>, vector<8x8xf32> -> vector<8x8xf32>
    %cst_56 = arith.constant dense<0xFF800000> : vector<8xf32>
    %118 = vector.multi_reduction <maximumf>, %117, %cst_56 [1] : vector<8x8xf32> to vector<8xf32>
    %119 = vector.shape_cast %118 : vector<8xf32> to vector<8x1xf32>
    %120 = vector.broadcast %119 : vector<8x1xf32> to vector<8x8xf32>
    %121 = arith.subf %117, %120 : vector<8x8xf32>
    %122 = math.exp %121 : vector<8x8xf32>
    %cst_57 = arith.constant dense<0.000000e+00> : vector<8xf32>
    %123 = vector.multi_reduction <add>, %122, %cst_57 [1] : vector<8x8xf32> to vector<8xf32>
    %124 = vector.shape_cast %123 : vector<8xf32> to vector<8x1xf32>
    %125 = tpu.reciprocal %124 {approx = true} : vector<8x1xf32> -> vector<8x1xf32>
    %126 = vector.broadcast %125 : vector<8x1xf32> to vector<8x8xf32>
    %127 = arith.mulf %122, %126 : vector<8x8xf32>
    %128 = arith.truncf %127 : vector<8x8xf32> to vector<8x8xbf16>
    %129 = vector.extract_strided_slice %82 {offsets = [0, 32], sizes = [8, 16], strides = [1, 1]} : vector<8x64xbf16> to vector<8x16xbf16>
    %cst_58 = arith.constant dense<0.000000e+00> : vector<8x16xf32>
    %130 = tpu.matmul %128, %129, %cst_58 {dimension_numbers = #tpu.dot_dimension_numbers<[1], [0], [0], [1], [0, 0, 1, 1], [], []>} : vector<8x8xbf16>, vector<8x16xbf16>, vector<8x16xf32> -> vector<8x16xf32>
    %131 = vector.extract_strided_slice %80 {offsets = [0, 48], sizes = [8, 16], strides = [1, 1]} : vector<8x64xbf16> to vector<8x16xbf16>
    %132 = vector.extract_strided_slice %81 {offsets = [0, 48], sizes = [8, 16], strides = [1, 1]} : vector<8x64xbf16> to vector<8x16xbf16>
    %cst_59 = arith.constant dense<0.000000e+00> : vector<8x8xf32>
    %133 = tpu.matmul %131, %132, %cst_59 {dimension_numbers = #tpu.dot_dimension_numbers<[1], [1], [0], [0], [0, 0, 1, 0], [], []>} : vector<8x16xbf16>, vector<8x16xbf16>, vector<8x8xf32> -> vector<8x8xf32>
    %cst_60 = arith.constant dense<0xFF800000> : vector<8xf32>
    %134 = vector.multi_reduction <maximumf>, %133, %cst_60 [1] : vector<8x8xf32> to vector<8xf32>
    %135 = vector.shape_cast %134 : vector<8xf32> to vector<8x1xf32>
    %136 = vector.broadcast %135 : vector<8x1xf32> to vector<8x8xf32>
    %137 = arith.subf %133, %136 : vector<8x8xf32>
    %138 = math.exp %137 : vector<8x8xf32>
    %cst_61 = arith.constant dense<0.000000e+00> : vector<8xf32>
    %139 = vector.multi_reduction <add>, %138, %cst_61 [1] : vector<8x8xf32> to vector<8xf32>
    %140 = vector.shape_cast %139 : vector<8xf32> to vector<8x1xf32>
    %141 = tpu.reciprocal %140 {approx = true} : vector<8x1xf32> -> vector<8x1xf32>
    %142 = vector.broadcast %141 : vector<8x1xf32> to vector<8x8xf32>
    %143 = arith.mulf %138, %142 : vector<8x8xf32>
    %144 = arith.truncf %143 : vector<8x8xf32> to vector<8x8xbf16>
    %145 = vector.extract_strided_slice %82 {offsets = [0, 48], sizes = [8, 16], strides = [1, 1]} : vector<8x64xbf16> to vector<8x16xbf16>
    %cst_62 = arith.constant dense<0.000000e+00> : vector<8x16xf32>
    %146 = tpu.matmul %144, %145, %cst_62 {dimension_numbers = #tpu.dot_dimension_numbers<[1], [0], [0], [1], [0, 0, 1, 1], [], []>} : vector<8x8xbf16>, vector<8x16xbf16>, vector<8x16xf32> -> vector<8x16xf32>
    %147 = tpu.concatenate %98, %114, %130, %146 in 1 : vector<8x16xf32>, vector<8x16xf32>, vector<8x16xf32>, vector<8x16xf32> -> vector<8x64xf32>
    %148 = arith.truncf %147 : vector<8x64xf32> to vector<8x64xbf16>
    %c0_63 = arith.constant 0 : index
    %c0_64 = arith.constant 0 : index
    %149 = vector.load %arg15[%c0_63, %c0_64] : memref<64x64xbf16, #tpu.memory_space<vmem>>, vector<64x64xbf16>
    %cst_65 = arith.constant dense<0.000000e+00> : vector<8x64xf32>
    %150 = tpu.matmul %148, %149, %cst_65 {dimension_numbers = #tpu.dot_dimension_numbers<[1], [0], [0], [1], [0, 0, 1, 1], [], []>} : vector<8x64xbf16>, vector<64x64xbf16>, vector<8x64xf32> -> vector<8x64xf32>
    %151 = arith.addf %31, %150 : vector<8x64xf32>
    %c0_66 = arith.constant 0 : index
    %c0_67 = arith.constant 0 : index
    %152 = vector.load %arg16[%c0_66, %c0_67] : memref<1x64xf32, #tpu.memory_space<vmem>>, vector<1x64xf32>
    %153 = vector.broadcast %152 : vector<1x64xf32> to vector<8x64xf32>
    %154 = arith.addf %151, %153 : vector<8x64xf32>
    %155 = arith.truncf %154 : vector<8x64xf32> to vector<8x64xbf16>
    %c0_68 = arith.constant 0 : index
    %c0_69 = arith.constant 0 : index
    %156 = vector.load %arg17[%c0_68, %c0_69] : memref<64x64xbf16, #tpu.memory_space<vmem>>, vector<64x64xbf16>
    %cst_70 = arith.constant dense<0.000000e+00> : vector<8x64xf32>
    %157 = tpu.matmul %155, %156, %cst_70 {dimension_numbers = #tpu.dot_dimension_numbers<[1], [0], [0], [1], [0, 0, 1, 1], [], []>} : vector<8x64xbf16>, vector<64x64xbf16>, vector<8x64xf32> -> vector<8x64xf32>
    %c0_71 = arith.constant 0 : index
    %c0_72 = arith.constant 0 : index
    %158 = vector.load %arg18[%c0_71, %c0_72] : memref<1x64xf32, #tpu.memory_space<vmem>>, vector<1x64xf32>
    %159 = vector.broadcast %158 : vector<1x64xf32> to vector<8x64xf32>
    %160 = arith.addf %157, %159 : vector<8x64xf32>
    %cst_73 = arith.constant dense<0.000000e+00> : vector<64xf32>
    %161 = vector.multi_reduction <add>, %160, %cst_73 [0] : vector<8x64xf32> to vector<64xf32>
    %162 = vector.shape_cast %161 : vector<64xf32> to vector<1x64xf32>
    %cst_74 = arith.constant 8.000000e+00 : f32
    %163 = vector.broadcast %cst_74 : f32 to vector<1x64xf32>
    %164 = arith.divf %162, %163 : vector<1x64xf32>
    %c0_75 = arith.constant 0 : index
    %c0_76 = arith.constant 0 : index
    %c0_77 = arith.constant 0 : index
    %165 = vector.load %arg19[%c0_75, %c0_76, %c0_77] : memref<1x1x64xf32, #tpu.memory_space<vmem>>, vector<1x1x64xf32>
    %166 = vector.shape_cast %165 : vector<1x1x64xf32> to vector<1x64xf32>
    %167 = vector.shape_cast %164 : vector<1x64xf32> to vector<1x1x64xf32>
    tpu.vector_store %arg19[%c0_75, %c0_76, %c0_77], %167 {strides = array<i32>} : memref<1x1x64xf32, #tpu.memory_space<vmem>>, vector<1x1x64xf32>,
    return
  }
  func.func @transform_0(%arg0: i32) -> (i32, i32, i32) {
    %c0_i32 = arith.constant 0 : i32
    %c0_i32_0 = arith.constant 0 : i32
    %c0_i32_1 = arith.constant 0 : i32
    return %arg0, %c0_i32, %c0_i32_0 : i32, i32, i32
  }
  func.func @transform_1(%arg0: i32) -> (i32, i32) {
    %c0_i32 = arith.constant 0 : i32
    %c0_i32_0 = arith.constant 0 : i32
    %c0_i32_1 = arith.constant 0 : i32
    return %c0_i32, %c0_i32_0 : i32, i32
  }
  func.func @transform_2(%arg0: i32) -> (i32, i32) {
    %c0_i32 = arith.constant 0 : i32
    %c0_i32_0 = arith.constant 0 : i32
    %c0_i32_1 = arith.constant 0 : i32
    return %c0_i32, %c0_i32_0 : i32, i32
  }
  func.func @transform_3(%arg0: i32) -> (i32, i32) {
    %c0_i32 = arith.constant 0 : i32
    %c0_i32_0 = arith.constant 0 : i32
    %c0_i32_1 = arith.constant 0 : i32
    return %c0_i32, %c0_i32_0 : i32, i32
  }
  func.func @transform_4(%arg0: i32) -> (i32, i32) {
    %c0_i32 = arith.constant 0 : i32
    %c0_i32_0 = arith.constant 0 : i32
    %c0_i32_1 = arith.constant 0 : i32
    return %c0_i32, %c0_i32_0 : i32, i32
  }
  func.func @transform_5(%arg0: i32) -> (i32, i32) {
    %c0_i32 = arith.constant 0 : i32
    %c0_i32_0 = arith.constant 0 : i32
    %c0_i32_1 = arith.constant 0 : i32
    return %c0_i32, %c0_i32_0 : i32, i32
  }
  func.func @transform_6(%arg0: i32) -> (i32, i32) {
    %c0_i32 = arith.constant 0 : i32
    %c0_i32_0 = arith.constant 0 : i32
    %c0_i32_1 = arith.constant 0 : i32
    return %c0_i32, %c0_i32_0 : i32, i32
  }
  func.func @transform_7(%arg0: i32) -> (i32, i32) {
    %c0_i32 = arith.constant 0 : i32
    %c0_i32_0 = arith.constant 0 : i32
    %c0_i32_1 = arith.constant 0 : i32
    return %c0_i32, %c0_i32_0 : i32, i32
  }
  func.func @transform_8(%arg0: i32) -> (i32, i32) {
    %c0_i32 = arith.constant 0 : i32
    %c0_i32_0 = arith.constant 0 : i32
    %c0_i32_1 = arith.constant 0 : i32
    return %c0_i32, %c0_i32_0 : i32, i32
  }
  func.func @transform_9(%arg0: i32) -> (i32, i32) {
    %c0_i32 = arith.constant 0 : i32
    %c0_i32_0 = arith.constant 0 : i32
    %c0_i32_1 = arith.constant 0 : i32
    return %c0_i32, %c0_i32_0 : i32, i32
  }
  func.func @transform_10(%arg0: i32) -> (i32, i32) {
    %c0_i32 = arith.constant 0 : i32
    %c0_i32_0 = arith.constant 0 : i32
    %c0_i32_1 = arith.constant 0 : i32
    return %c0_i32, %c0_i32_0 : i32, i32
  }
  func.func @transform_11(%arg0: i32) -> (i32, i32) {
    %c0_i32 = arith.constant 0 : i32
    %c0_i32_0 = arith.constant 0 : i32
    %c0_i32_1 = arith.constant 0 : i32
    return %c0_i32, %c0_i32_0 : i32, i32
  }
  func.func @transform_12(%arg0: i32) -> (i32, i32) {
    %c0_i32 = arith.constant 0 : i32
    %c0_i32_0 = arith.constant 0 : i32
    %c0_i32_1 = arith.constant 0 : i32
    return %c0_i32, %c0_i32_0 : i32, i32
  }
  func.func @transform_13(%arg0: i32) -> (i32, i32) {
    %c0_i32 = arith.constant 0 : i32
    %c0_i32_0 = arith.constant 0 : i32
    %c0_i32_1 = arith.constant 0 : i32
    return %c0_i32, %c0_i32_0 : i32, i32
  }
  func.func @transform_14(%arg0: i32) -> (i32, i32) {
    %c0_i32 = arith.constant 0 : i32
    %c0_i32_0 = arith.constant 0 : i32
    %c0_i32_1 = arith.constant 0 : i32
    return %c0_i32, %c0_i32_0 : i32, i32
  }
  func.func @transform_15(%arg0: i32) -> (i32, i32) {
    %c0_i32 = arith.constant 0 : i32
    %c0_i32_0 = arith.constant 0 : i32
    %c0_i32_1 = arith.constant 0 : i32
    return %c0_i32, %c0_i32_0 : i32, i32
  }
  func.func @transform_16(%arg0: i32) -> (i32, i32) {
    %c0_i32 = arith.constant 0 : i32
    %c0_i32_0 = arith.constant 0 : i32
    %c0_i32_1 = arith.constant 0 : i32
    return %c0_i32, %c0_i32_0 : i32, i32
  }
  func.func @transform_17(%arg0: i32) -> (i32, i32) {
    %c0_i32 = arith.constant 0 : i32
    %c0_i32_0 = arith.constant 0 : i32
    %c0_i32_1 = arith.constant 0 : i32
    return %c0_i32, %c0_i32_0 : i32, i32
  }
  func.func @transform_18(%arg0: i32) -> (i32, i32, i32) {
    %c0_i32 = arith.constant 0 : i32
    %c0_i32_0 = arith.constant 0 : i32
    %c0_i32_1 = arith.constant 0 : i32
    return %arg0, %c0_i32, %c0_i32_0 : i32, i32, i32
  }
}

</mosaic_0001>

<bundles_post_ra>
// kernel: collapsing_transformer_forward.2
= control target key start
LH: loop header
LB: loop body
LE: loop exit
PB: predicated region body
PF: predicated region fallthrough
CT: control target
= control target key end

     0   :  { %s3266_s0 = inlined_call_operand.vmem [shape: f32[2,8,32], index: 0, kind: input, shape index: {}]   ;;  %s3267_s1 = inlined_call_operand.hbm [shape: f32[8,32], index: 1, kind: input, shape index: {}]   ;;  %s3268_s2 = inlined_call_operand.vmem [shape: f32[8,32], index: 2, kind: input, shape index: {}]   ;;  %s3269_s3 = inlined_call_operand.hbm [shape: bf16[32,32], index: 3, kind: input, shape index: {}]   ;;  %s3270_s4 = inlined_call_operand.hbm [shape: f32[2,1,32], index: 4, kind: input, shape index: {}]   ;;  %s3271_s5 = inlined_call_operand.hbm [shape: bf16[2,32,32], index: 5, kind: input, shape index: {}]   ;;  %s3272_s6 = inlined_call_operand.hbm [shape: bf16[2,32,32], index: 6, kind: input, shape index: {}]   ;;  %s3273_s7 = inlined_call_operand.hbm [shape: bf16[2,32,32], index: 7, kind: input, shape index: {}]   ;;  %s3274_s8 = inlined_call_operand.hbm [shape: bf16[2,32,32], index: 8, kind: input, shape index: {}]   ;;  %s3275_s9 = inlined_call_operand.vmem [shape: f32[2,1,32], index: 9, kind: input, shape index: {}]   ;;  %s3276_s10 = inlined_call_operand.vmem [shape: f32[2,1,32], index: 10, kind: input, shape index: {}]   ;;  %s3277_s11 = inlined_call_operand.hbm [shape: bf16[2,32,32], index: 11, kind: input, shape index: {}]   ;;  %s3278_s12 = inlined_call_operand.hbm [shape: f32[2,1,32], index: 12, kind: input, shape index: {}]   ;;  %s3279_s13 = inlined_call_operand.hbm [shape: bf16[2,32,32], index: 13, kind: input, shape index: {}]   ;;  %s3280_s14 = inlined_call_operand.hbm [shape: f32[2,1,32], index: 14, kind: input, shape index: {}]   ;;  %s3281_s15 = inlined_call_operand.hbm [shape: bf16[2,32,32], index: 15, kind: input, shape index: {}]   ;;  %s3282_s16 = inlined_call_operand.hbm [shape: f32[2,1,32], index: 16, kind: input, shape index: {}]   ;;  %s3283_s17 = inlined_call_operand.vmem [shape: f32[2,8,32], index: 17, kind: output, shape index: {}]  }
   0x1   :  { %3297 = sst [smem:[#allocation30_spill]] %s3266_s0 }
   0x2   :  { %3298 = sst [smem:[#allocation31_spill]] %s3267_s1 }
   0x3   :  { %3299 = sst [smem:[#allocation32_spill]] %s3268_s2 }
   0x4   :  { %3300 = sst [smem:[#allocation33_spill]] %s3269_s3 }
   0x5   :  { %3301 = sst [smem:[#allocation34_spill]] %s3270_s4 }
   0x6   :  { %3302 = sst [smem:[#allocation35_spill]] %s3271_s5 }
   0x7   :  { %3303 = sst [smem:[#allocation36_spill]] %s3272_s6 }
   0x8   :  { %3304 = sst [smem:[#allocation37_spill]] %s3273_s7 }
   0x9   :  { %3305 = sst [smem:[#allocation38_spill]] %s3274_s8 }
   0xa   :  { %3306 = sst [smem:[#allocation39_spill]] %s3275_s9 }
   0xb   :  { %3307 = sst [smem:[#allocation40_spill]] %s3276_s10 }
   0xc   :  { %3308 = sst [smem:[#allocation41_spill]] %s3277_s11 }
   0xd   :  { %3309 = sst [smem:[#allocation42_spill]] %s3278_s12 }
   0xe   :  { %3310 = sst [smem:[#allocation43_spill]] %s3279_s13 }
   0xf   :  { %3311 = sst [smem:[#allocation44_spill]] %s3280_s14 }
  0x10   :  { %3312 = sst [smem:[#allocation45_spill]] %s3281_s15 }
  0x11   :  { %3313 = sst [smem:[#allocation46_spill]] %s3282_s16 }
  0x12   :  { %3314 = sst [smem:[#allocation47_spill]] %s3283_s17 }
  0x13   :  { %22 = vsyncpa [#allocation4], 0 }
  0x14   :  { %23 = vsyncpa [#allocation6], 0  ;;  %s2845_s24 = smov 0   ;;  %s2847_s25 = smov 0  }
  0x15   :  { %s2849_s26 = smov 0   ;;  %s2851_s27 = smov 0  }
  0x16   :  { %s2853_s28 = smov 0   ;;  %s2855_s29 = smov 0  }
  0x17   :  { %s2857_s0 = smov 0   ;;  %s2859_s30 = smov 0  }
  0x18 LB: > { %3315 = sst [smem:[#allocation21_spill]] %s2718_s25  ;;  %s3284_s18 = sadd.s32 4294967295, %s2742_s30   ;;  %s2742_s30 = sphi %s2859_s30, %s3372_s30   ;;  %s2738_s0 = sphi %s2857_s0, %s3371_s0   ;;  %s2734_s29 = sphi %s2855_s29, %s3370_s29   ;;  %s2730_s28 = sphi %s2853_s28, %s3369_s28   ;;  %s2726_s27 = sphi %s2851_s27, %s3368_s27   ;;  %s2722_s26 = sphi %s2849_s26, %s3367_s26   ;;  %s2718_s25 = sphi %s2847_s25, %s3366_s25   ;;  %s2714_s24 = sphi %s2845_s24, %s3363_s24  }
  0x19   : > { %3316 = sst [smem:[#allocation22_spill]] %s2726_s27  ;;  %p144_p0 = scmp.ne.s32.totalorder %s2722_s26, %s2718_s25 }
  0x1a   : > { %3317 = sst [smem:[#allocation23_spill]] %s2730_s28  ;;  %p145_p1 = scmp.eq.s32.totalorder %s2742_s30, 0 }
  0x1b   : > { %3318 = sst [smem:[#allocation24_spill]] %s2742_s30  ;;  %p150_p2 = scmp.ne.s32.totalorder %s2718_s25, %s2714_s24 }
  0x1c   : > { %p2891_p3 = scmp.eq.s32.totalorder %s3284_s18, 0  ;;  %p2895_p4 = por %p145_p1, %p144_p0 }
  0x1d   : > { %p1952_p5 = scmp.ge.s32.totalorder %s2742_s30, 1  ;;  %p499_p7 = scmp.lt.s32.totalorder %s2742_s30, 5 }
  0x1e   : > { %s3319_s1 = scalar_select %p2891_p3, 1, 0 }
  0x1f   : > { %p2902_p6 = por %p2891_p3, %p150_p2  ;;  %s3324_s24 = sld [smem:[#allocation31_spill]] }
  0x20   : > { %3320 = sst [smem:[#allocation25_spill]] %s3319_s1  ;;  %p2910_p8 = pnand %p1952_p5, %p499_p7 }
  0x21   : > { %s3322_s21 = scalar_select %p2902_p6, 1, 0 }
  0x22   : > { %s3325_s19 = scalar_select %p2910_p8, 1, 0 }
  0x23   : > { %3323 = sst [smem:[#allocation26_spill]] %s3322_s21  ;;  %p2127_p9 = pneg %p2910_p8 }
  0x24   : > { %3326 = sst [smem:[#allocation27_spill]] %s3325_s19  ;;  %s2744_s2 = smov [#allocation3]  }
  0x25   : > { %s511_s18 = sshll.u32 %s3324_s24, 4  ;;  %s513_s17 = sshll.u32 %s2744_s2, 4  ;;  %s512_s18 = int_to_ptr.hbm [resolvable:$true] %s511_s18  ;;  %s514_s17 = int_to_ptr.vmem [resolvable:$true] %s513_s17 }
  0x26   : > { %p2170_p10 = scmp.lt.s32.totalorder %s2742_s30, 4  ;;  %p2919_p11 = pnand %p2127_p9, %p2891_p3 }
  0x27   : > { %s38_s24 = sadd.s32 1, %s2734_s29  ;;  %s41_s2 = sadd.s32 1, %s2738_s0 }
  0x28   : > { %p2925_p12 = pnand %p2170_p10, %p2895_p4  ;;  %p39_p13 = scmp.ge.s32.totalorder %s38_s24, 2 }
  0x29   : > { %2130 = dma.hbm_to_vmem [thread:$0]  (!%p2919_p11), %s512_s18, 128, %s514_s17, [#allocation4]  }
  0x2a   : > { %s548_s10 = sand.u32 1, %s2742_s30   ;;  %s2935_s9 = sand.u32 1, %s2722_s26  }
  0x2b   : > { %s3374_s24 = smov (%p39_p13, %s38_s24), 0  ;;  %s3376_s2 = smov (!%p39_p13, %s41_s2), %s2738_s0 }
  0x2c   : > { %3329 = sst [smem:[#allocation28_spill]] %s3374_s24  ;;  %s134_s20 = ssub.s32 %s2734_s29, %s3374_s24 }
  0x2d   : > { %p43_p0 = scmp.ge.s32.totalorder %s3376_s2, 2  ;;  %p135_p1 = scmp.eq.s32.totalorder %s134_s20, 0 }
  0x2e   : > { %s3330_s4 = sld [smem:[#allocation34_spill]]  ;;  %s551_s18 = scalar_lea.vmem [#allocation7], %s2935_s9 }
  0x2f   : > { %s558_s21 = sshll.u32 %s551_s18, 4  ;;  %s3378_s2 = smov (%p43_p0, %s3376_s2), 0  ;;  %s559_s21 = int_to_ptr.vmem [resolvable:$true] %s558_s21 }
  0x30   : > { %3331 = sst [smem:[#allocation29_spill]] %s3378_s2  ;;  %s3332_s25 = sadd.s32 1, %s2722_s26 }
  0x31   : > { %s2952_s30 = scalar_select %p135_p1, %s2722_s26, %s3332_s25  }
  0x32   : > { %s2955_s19 = sshll.u32 %s2935_s9, 4  ;;  %s2957_s20 = scalar_lea.sflag [#allocation4], %s548_s10 }
  0x33   : > { %s2963_s27 = sshll.u32 %s2734_s29, 4  ;;  %s3333_s5 = sld [smem:[#allocation35_spill]] }
  0x34   : > { %s554_s17 = scalar_lea.hbm %s3330_s4, %s2734_s29  ;;  %s569_s18 = scalar_lea.vmem [#allocation8], %s2955_s19 }
  0x35   : > { %s556_s1 = sshll.u32 %s554_s17, 4  ;;  %s577_s4 = sshll.u32 %s569_s18, 4  ;;  %s557_s1 = int_to_ptr.hbm [resolvable:$true] %s556_s1  ;;  %s578_s4 = int_to_ptr.vmem [resolvable:$true] %s577_s4 }
  0x36   : > { %2137 = dma.hbm_to_vmem [thread:$0]  (!%p2925_p12), %s557_s1, 16, %s559_s21, %s2957_s20  }
  0x37   : > { %s3295_s2 = smov 64   ;;  %s2746_s1 = smov 4  }
  0x38   : > { %s3334_s6 = sld [smem:[#allocation36_spill]]  ;;  %s613_s21 = scalar_lea.vmem [#allocation10], %s2955_s19 }
  0x39   : > { %s574_s17 = scalar_lea.hbm %s3333_s5, %s2963_s27  ;;  %s591_s5 = scalar_lea.vmem [#allocation9], %s2955_s19 }
  0x3a   : > { %s575_s10 = sshll.u32 %s574_s17, 4  ;;  %s599_s18 = sshll.u32 %s591_s5, 4  ;;  %s576_s10 = int_to_ptr.hbm [resolvable:$true] %s575_s10  ;;  %s600_s18 = int_to_ptr.vmem [resolvable:$true] %s599_s18 }
  0x3b   : > { %2140 = dma.hbm_to_vmem [thread:$0]  (!%p2925_p12), %s576_s10, 256, %s578_s4, %s2957_s20, %s3295_s2, %s3295_s2, %s2746_s1  }
  0x3c   : > { %s3335_s7 = sld [smem:[#allocation37_spill]]  ;;  %s621_s28 = sshll.u32 %s613_s21, 4  ;;  %s622_s28 = int_to_ptr.vmem [resolvable:$true] %s621_s28 }
  0x3d   : > { %s3336_s8 = sld [smem:[#allocation38_spill]] }
  0x3e   : > { %s596_s25 = scalar_lea.hbm %s3334_s6, %s2963_s27  ;;  %s3337_s11 = sld [smem:[#allocation41_spill]] }
  0x3f   : > { %s597_s17 = sshll.u32 %s596_s25, 4  ;;  %s3338_s12 = sld [smem:[#allocation42_spill]]  ;;  %s598_s17 = int_to_ptr.hbm [resolvable:$true] %s597_s17 }
  0x40   : > { %2143 = dma.hbm_to_vmem [thread:$0]  (!%p2925_p12), %s598_s17, 256, %s600_s18, %s2957_s20, %s3295_s2, %s3295_s2, %s2746_s1  }
  0x41   : > { %s635_s18 = scalar_lea.vmem [#allocation11], %s2955_s19  ;;  %s3339_s13 = sld [smem:[#allocation43_spill]] }
  0x42   : > { %s618_s10 = scalar_lea.hbm %s3335_s7, %s2963_s27  ;;  %s643_s17 = sshll.u32 %s635_s18, 4  ;;  %s644_s17 = int_to_ptr.vmem [resolvable:$true] %s643_s17 }
  0x43   : > { %s619_s6 = sshll.u32 %s618_s10, 4  ;;  %s640_s24 = scalar_lea.hbm %s3336_s8, %s2963_s27  ;;  %s620_s6 = int_to_ptr.hbm [resolvable:$true] %s619_s6 }
  0x44   : > { %2146 = dma.hbm_to_vmem [thread:$0]  (!%p2925_p12), %s620_s6, 256, %s622_s28, %s2957_s20, %s3295_s2, %s3295_s2, %s2746_s1  }
  0x45   : > { %s641_s4 = sshll.u32 %s640_s24, 4  ;;  %s674_s21 = scalar_lea.hbm %s3337_s11, %s2963_s27  ;;  %s642_s4 = int_to_ptr.hbm [resolvable:$true] %s641_s4 }
  0x46   : > { %2149 = dma.hbm_to_vmem [thread:$0]  (!%p2925_p12), %s642_s4, 256, %s644_s17, %s2957_s20, %s3295_s2, %s3295_s2, %s2746_s1  }
  0x47   : > { %s669_s28 = scalar_lea.vmem [#allocation12], %s2955_s19  ;;  %s675_s25 = sshll.u32 %s674_s21, 4  ;;  %s676_s25 = int_to_ptr.hbm [resolvable:$true] %s675_s25 }
  0x48   : > { %s677_s5 = sshll.u32 %s669_s28, 4  ;;  %s693_s17 = scalar_lea.hbm %s3338_s12, %s2734_s29  ;;  %s678_s5 = int_to_ptr.vmem [resolvable:$true] %s677_s5 }
  0x49   : > { %2152 = dma.hbm_to_vmem [thread:$0]  (!%p2925_p12), %s676_s25, 256, %s678_s5, %s2957_s20, %s3295_s2, %s3295_s2, %s2746_s1  }
  0x4a   : > { %s690_s4 = scalar_lea.vmem [#allocation13], %s2935_s9  ;;  %s695_s6 = sshll.u32 %s693_s17, 4  ;;  %s696_s6 = int_to_ptr.hbm [resolvable:$true] %s695_s6 }
  0x4b   : > { %s697_s10 = sshll.u32 %s690_s4, 4  ;;  %s713_s5 = scalar_lea.hbm %s3339_s13, %s2963_s27  ;;  %s698_s10 = int_to_ptr.vmem [resolvable:$true] %s697_s10 }
  0x4c   : > { %2155 = dma.hbm_to_vmem [thread:$0]  (!%p2925_p12), %s696_s6, 16, %s698_s10, %s2957_s20  }
  0x4d   : > { %s708_s25 = scalar_lea.vmem [#allocation14], %s2955_s19  ;;  %s714_s24 = sshll.u32 %s713_s5, 4  ;;  %s715_s24 = int_to_ptr.hbm [resolvable:$true] %s714_s24 }
  0x4e   : > { %s716_s2 = sshll.u32 %s708_s25, 4  ;;  %s3340_s18 = smov 64   ;;  %s717_s2 = int_to_ptr.vmem [resolvable:$true] %s716_s2 }
  0x4f   : > { %2158 = dma.hbm_to_vmem [thread:$0]  (!%p2925_p12), %s715_s24, 256, %s717_s2, %s2957_s20, %s3340_s18, %s3340_s18, %s2746_s1  }
  0x50   : > { %s3341_s14 = sld [smem:[#allocation44_spill]]  ;;  %s729_s6 = scalar_lea.vmem [#allocation15], %s2935_s9 }
  0x51   : > { %s736_s21 = sshll.u32 %s729_s6, 4  ;;  %s3342_s15 = sld [smem:[#allocation45_spill]]  ;;  %s737_s21 = int_to_ptr.vmem [resolvable:$true] %s736_s21 }
  0x52   : > { %s747_s8 = scalar_lea.vmem [#allocation16], %s2955_s19  ;;  %s3343_s3 = sld [smem:[#allocation33_spill]] }
  0x53   : > { %s755_s2 = sshll.u32 %s747_s8, 4  ;;  %s2747_s6 = smov [#allocation5]   ;;  %s756_s2 = int_to_ptr.vmem [resolvable:$true] %s755_s2 }
  0x54   : > { %s3344_s16 = sld [smem:[#allocation46_spill]] }
  0x56   : > { %s732_s10 = scalar_lea.hbm %s3341_s14, %s2734_s29 }
  0x57   : > { %s734_s28 = sshll.u32 %s732_s10, 4  ;;  %s752_s7 = scalar_lea.hbm %s3342_s15, %s2963_s27  ;;  %s735_s28 = int_to_ptr.hbm [resolvable:$true] %s734_s28 }
  0x58   : > { %2161 = dma.hbm_to_vmem [thread:$0]  (!%p2925_p12), %s735_s28, 16, %s737_s21, %s2957_s20  }
  0x59   : > { %s753_s24 = sshll.u32 %s752_s7, 4  ;;  %s525_s10 = sshll.u32 %s3343_s3, 4  ;;  %s754_s24 = int_to_ptr.hbm [resolvable:$true] %s753_s24  ;;  %s526_s10 = int_to_ptr.hbm [resolvable:$true] %s525_s10 }
  0x5a   : > { %2164 = dma.hbm_to_vmem [thread:$0]  (!%p2925_p12), %s754_s24, 256, %s756_s2, %s2957_s20, %s3340_s18, %s3340_s18, %s2746_s1  }
  0x5b   : > { %s527_s21 = sshll.u32 %s2747_s6, 4  ;;  %s771_s7 = scalar_lea.hbm %s3344_s16, %s2734_s29  ;;  %s528_s21 = int_to_ptr.vmem [resolvable:$true] %s527_s21 }
  0x5c   : > { %2133 = dma.hbm_to_vmem [thread:$0]  (!%p2919_p11), %s526_s10, 256, %s528_s21, [#allocation6], %s3340_s18, %s3340_s18, %s2746_s1  }
  0x5d   : > { %s773_s27 = sshll.u32 %s771_s7, 4  ;;  %s768_s28 = scalar_lea.vmem [#allocation17], %s2935_s9  ;;  %s774_s27 = int_to_ptr.hbm [resolvable:$true] %s773_s27 }
  0x5e   : > { %s775_s5 = sshll.u32 %s768_s28, 4  ;;  %784 = sbr.rel (%p2910_p8) target bundleno = 1898 (0x76a), region = 88  ;;  %s776_s5 = int_to_ptr.vmem [resolvable:$true] %s775_s5 }
  0x5f   : > { %2167 = dma.hbm_to_vmem [thread:$0]  (!%p2925_p12), %s774_s27, 16, %s776_s5, %s2957_s20  }
  0x63   : > { %2701 = dma.done.wait (%p2891_p3), [#allocation4], 128  }
  0x64   : > { %2703 = vsyncadd (%p2891_p3), [#allocation4], 4294967168 }
  0x65   : > { %2705 = dma.done.wait (%p2891_p3), [#allocation6], 256  }
  0x66   : > { %2707 = vsyncadd (%p2891_p3), [#allocation6], 4294967040  ;;  %s3347_s9 = sld [smem:[#allocation24_spill]] }
  0x67   : > { %s3349_s1 = sld [smem:[#allocation21_spill]] }
  0x6c   : > { %s3348_s22 = sadd.s32 4294967295, %s3347_s9  }
  0x6d   : > { %s796_s20 = sand.u32 1, %s3348_s22   ;;  %s3087_s18 = sand.u32 1, %s3349_s1  }
  0x6e   : > { %s797_s24 = scalar_lea.sflag [#allocation4], %s796_s20 }
  0x6f   : > { %2709 = dma.done.wait (%p2902_p6), %s797_s24, 1856  }
  0x70   : > { %2711 = vsyncadd (%p2902_p6), %s797_s24, 4294965440  ;;  %s3351_s4 = sld [smem:[#allocation23_spill]]  ;;  %s3095_s6 = sshll.u32 %s3087_s18, 4 }
  0x71   : > { %s3352_s10 = sld [smem:[#allocation22_spill]]  ;;  %s809_s12 = scalar_lea.vmem [#allocation8], %s3095_s6 }
  0x72   : > { %s3353_s27 = sld [smem:[#allocation30_spill]]  ;;  %s819_s13 = scalar_lea.vmem [#allocation9], %s3095_s6 }
  0x73   : > { %s3354_s2 = sld [smem:[#allocation39_spill]]  ;;  %s839_s14 = scalar_lea.vmem [#allocation11], %s3095_s6 }
  0x74   : > { %s3355_s23 = sld [smem:[#allocation40_spill]]  ;;  %s849_s15 = scalar_lea.vmem [#allocation12], %s3095_s6 }
  0x75   : > { %s3356_s3 = sld [smem:[#allocation47_spill]]  ;;  %s858_s8 = scalar_lea.vmem [#allocation13], %s3087_s18 }
  0x76   : > { %p1003_p2 = scmp.lt.s32.totalorder %s3351_s4, 1  ;;  %s868_s7 = scalar_lea.vmem [#allocation14], %s3095_s6 }
  0x77   : > { %p1007_p3 = scmp.lt.s32.totalorder %s3352_s10, 1  ;;  %s887_s16 = scalar_lea.vmem [#allocation16], %s3095_s6 }
  0x78   : > { %s3380_s4 = smov (!%p1003_p2, %s3351_s4), 1  ;;  %s896_s5 = scalar_lea.vmem [#allocation17], %s3087_s18 }
  0x79   : > { %s3101_s21 = scalar_select %p1007_p3, %s3352_s10, 1 }
  0x7a   : > { %s1987_s19 = sshll.u32 %s3380_s4, 3  ;;  %s829_s4 = scalar_lea.vmem [#allocation10], %s3095_s6 }
  0x7b   : > { %s1006_s28 = scalar_lea.vmem %s3353_s27, %s1987_s19  ;;  %s1009_s9 = scalar_lea.vmem %s3354_s2, %s3101_s21 }
  0x7c   : > { %s1012_s20 = scalar_lea.vmem %s3355_s23, %s3101_s21  ;;  %s3117_s11 = scalar_lea.vmem %s3356_s3, %s1987_s19 }
  0x7d   : > { %s877_s27 = scalar_lea.vmem [#allocation15], %s3087_s18  ;;  %p1989_p4 = scmp.ne.s32.totalorder %s3352_s10, 0 }
  0x7f   : > { %1021 = sbr.rel (%p1989_p4) target bundleno = 134 (0x86), region = 144 }
  0x84   : > { %v1022_v0 = vld [vmem:[%s1006_s28] sm:$0xff]  ;;  %vm1023_vm0 = vcmask 261120  }
  0x85   : > { %1024 = vst.msk [vmem:[#allocation2] sm:$0xff] %vm1023_vm0, %v1022_v0 }
  0x86 PF: > { %vm1034_vm1 = vcmask 261120   ;;  %v2748_v4 = vmov 32.0   ;;  %v2084_v8 = vld [vmem:[%s809_s12 + $0x8] sm:$0xff]  ;;  %v2083_v12 = vld [vmem:[%s809_s12] sm:$0xff]  ;;  %s3357_s3 = scalar_lea.vmem [#allocation7], %s3087_s18  ;;  %vm1244_vm6 = vcmask 1043456  }
  0x87   : > { %2254 = vrcp.f32 %v2748_v4  ;;  %v2086_v9 = vld [vmem:[%s819_s13 + $0x8] sm:$0xff]  ;;  %1088 = vmatpush.bf16.msra.mxu0 %v2084_v8  ;;  %v2085_v13 = vld [vmem:[%s819_s13] sm:$0xff]  ;;  %s3358_s17 = sld [smem:[#allocation32_spill]]  ;;  %vm1209_vm7 = vcmask 64512   ;;  %s2749_s10 = smov 104   ;;  %vm1451_vm8 = vcmask 130048  }
  0x88   : > { %v2088_v10 = vld [vmem:[%s829_s4 + $0x8] sm:$0xff]  ;;  %1117 = vmatpush.bf16.msra.mxu1 %v2086_v9  ;;  %v2087_v14 = vld [vmem:[%s829_s4] sm:$0xff]  ;;  %s2750_s19 = smov 120   ;;  %s2751_s28 = smov 112   ;;  %vm1453_vm9 = vcmask 195584  }
  0x89   : > { %1146 = vmatpush.bf16.msra.mxu2 %v2088_v10  ;;  %v2082_v17 = vld [vmem:[#allocation5 + $0x8] sm:$0xff]  ;;  %v2248_v27 = vld [vmem:[%s3357_s3] ss:$0 sm:$0xff]  ;;  %v1026_v43 = vld [vmem:[#allocation3] sm:$0xff]  ;;  %s2752_s25 = smov 8   ;;  %s2753_s2 = smov 16  }
  0x8a   : > { %1176 = vmatpush.bf16.msra.mxu3 %v2082_v17  ;;  %v2081_v32 = vld [vmem:[#allocation5] sm:$0xff]  ;;  %s2754_s22 = smov 24  }
  0x8b   : > { %1089 = vmatpush.bf16.msra.mxu0 %v2083_v12 }
  0x8c   : > { %v3130_v1 = vld [vmem:[#allocation2] sm:$0xff]  ;;  %1118 = vmatpush.bf16.msra.mxu1 %v2085_v13 }
  0x8d   : > { %v1033_v2 = vmul.f32 %v3130_v1, %v3130_v1  ;;  %v2255_v5 = vpop.eup %2254  ;;  %1147 = vmatpush.bf16.msra.mxu2 %v2087_v14  ;;  %v1027_v44 = vld [vmem:[%s3358_s17] sm:$0xff] }
  0x8e   : > { %v1039_v6 = vmul.f32 32.0, %v2255_v5  ;;  %vm1043_vm2 = vweird.f32 %v2255_v5  ;;  %1177 = vmatpush.bf16.msra.mxu3 %v2081_v32 }
  0x8f   : > { %v1035_v3 = vsel %vm1034_vm1, %v1033_v2, 0.0  ;;  %1196 = vmatpush.bf16.msrb.mxu0 %v2082_v17 }
  0x90   : > { %1036 = vadd.xlane.f32.xlu0 %v1035_v3  ;;  %v1040_v7 = vsub.f32 1.0, %v1039_v6 }
  0x92   : > { %v1041_v11 = vmul.f32 %v2255_v5, %v1040_v7 }
  0x93   : > { %1197 = vmatpush.bf16.msrb.mxu0 %v2081_v32 }
  0x94   : > { %v1042_v15 = vadd.f32 %v2255_v5, %v1041_v11 }
  0x96   : > { %v3147_v16 = vsel %vm1043_vm2, %v2255_v5, %v1042_v15 }
 0x103   : > { %v1037_v18 = vpop.xlane.xlu0 %1036 }
 0x104   : > { %v1045_v19 = vmul.f32 %v3147_v16, %v1037_v18 }
 0x106   : > { %v1046_v20 = vmax.f32 %v1045_v19, 1e-16 }
 0x108   : > { %2256 = vrsqrt.f32 %v1046_v20  ;;  %vm1053_vm4 = vweird.f32 %v1046_v20 }
 0x10e   : > { %v2257_v21 = vpop.eup %2256 }
 0x10f   : > { %v1048_v22 = vmul.f32 %v2257_v21, %v1046_v20  ;;  %vm1054_vm3 = vweird.f32 %v2257_v21 }
 0x110   : > { %vm1055_vm5 = vmor %vm1053_vm4, %vm1054_vm3 }
 0x111   : > { %v1049_v23 = vmul.f32 %v2257_v21, %v1048_v22 }
 0x113   : > { %v1050_v24 = vmul.f32 0.5, %v1049_v23 }
 0x115   : > { %v1051_v25 = vsub.f32 1.5, %v1050_v24 }
 0x117   : > { %v1052_v26 = vmul.f32 %v2257_v21, %v1051_v25 }
 0x119   : > { %v1056_v28 = vsel %vm1055_vm5, %v2257_v21, %v1052_v26 }
 0x11a   : > { %v1057_v29 = vmul.f32 %v1056_v28, %v3130_v1 }
 0x11c   : > { %v1061_v30 = vmul.f32 %v2248_v27, %v1057_v29 }
 0x11e   : > { %v1062_v31 = vpack.c.bf16 %v1061_v30, %v1061_v30 }
 0x120   : > { %1998 = vmatmul.msk.bf16.vlgmr.msra.gmra.mxu0 %vm1034_vm1, %v1062_v31  ;;  %2007 = vmatmul.msk.bf16.vlgmr.msra.gmra.mxu1 %vm1034_vm1, %v1062_v31 }
 0x121   : > { %2016 = vmatmul.msk.bf16.vlgmr.msra.gmra.mxu2 %vm1034_vm1, %v1062_v31 }
 0x19d   : > { %v1091_v33 = vpop.f32.mrf.mxu0  ;;  %v1120_v34 = vpop.f32.mrf.mxu1 }
 0x19e   : > { %v1154_v35 = vpack.c.bf16 %v1091_v33, %v1091_v33  ;;  %v1186_v36 = vpack.c.bf16 %v1120_v34, %v1120_v34  ;;  %v1185_v46 = vmul.f32 %v1120_v34, %v1026_v43  ;;  %v1153_v51 = vmul.f32 %v1091_v33, %v1026_v43 }
 0x1a0   : > { %2025 = vmatmul.msk.bf16.vlgmr.msra.gmra.mxu3 %vm1034_vm1, %v1154_v35  ;;  %2026 = vmatmul.msk.bf16.vlgmr.msrb.gmra.mxu0 %vm1034_vm1, %v1186_v36 }
 0x1a4   : > { %v1149_v37 = vpop.f32.mrf.mxu2 }
 0x1a5   : > { %v3158_v38 = vpack.c.bf16 %v1149_v37, %v1149_v37  ;;  %v1093_v39 = vpop.f32.mrf.mxu0  ;;  %v1122_v40 = vpop.f32.mrf.mxu1 }
 0x1a7   : > { %v1246_v41 = vsel %vm1244_vm6, %v3158_v38, 0  ;;  %v1303_v27 = vunpack.c.l.b16 %v3158_v38 }
 0x1a8   : > { %1255 = vmatpush.bf16.msrb.mxu2 %v1246_v41 }
 0x1a9   : > { %v1304_v28 = vpack.c.b16 %v1303_v27, %v1303_v27 }
 0x1ac   : > { %v1151_v42 = vpop.f32.mrf.mxu2 }
 0x21d   : > { %v1199_v45 = vpop.f32.mrf.mxu0 }
 0x21e   : > { %v1203_v47 = vmul.f32 %v1199_v45, %v1027_v44 }
 0x220   : > { %v1204_v48 = vadd.f32 %v1203_v47, %v1185_v46 }
 0x222   : > { %v1207_v49 = vpack.c.bf16 %v1204_v48, %v1204_v48 }
 0x223   : > { %v1179_v50 = vpop.f32.mrf.mxu3 }
 0x224   : > { %v1183_v52 = vmul.f32 %v1179_v50, %v1027_v44  ;;  %v1214_v53 = vsel %vm1209_vm7, %v1207_v49, 0  ;;  %v1267_v54 = vunpack.c.l.b16 %v1207_v49 }
 0x225   : > { %v1201_v55 = vpop.f32.mrf.mxu0  ;;  %1223 = vmatpush.bf16.xpose.msrb.mxu1 %v1214_v53 }
 0x226   : > { %v1184_v56 = vadd.f32 %v1183_v52, %v1153_v51  ;;  %v1268_v57 = vpack.c.b16 %v1267_v54, %v1267_v54 }
 0x228   : > { %v1205_v58 = vmul.f32 0.35355338, %v1184_v56  ;;  %1384 = vrot.lane.b32.xlu2 %v1268_v57, %s2749_s10  ;;  %1269 = vrot.lane.b32.xlu0 %v1268_v57, %s2750_s19 }
 0x22a   : > { %v1206_v59 = vpack.c.bf16 %v1205_v58, %v1205_v58 }
 0x22b   : > { %v1181_v60 = vpop.f32.mrf.mxu3 }
 0x22c   : > { %2027 = vmatmul.msk.bf16.vlgmr.msrb.gmra.mxu1 %vm1209_vm7, %v1206_v59  ;;  %v1262_v61 = vunpack.c.l.b16 %v1206_v59 }
 0x22e   : > { %v1263_v62 = vpack.c.b16 %v1262_v61, %v1262_v61 }
 0x230   : > { %1264 = vrot.lane.b32.xlu1 %v1263_v62, %s2750_s19  ;;  %1326 = vrot.lane.b32.xlu2 %v1263_v62, %s2751_s28 }
 0x238   : > { %1328 = vrot.lane.b32.xlu1 %v1268_v57, %s2751_s28 }
 0x240   : > { %1382 = vrot.lane.b32.xlu1 %v1263_v62, %s2749_s10 }
 0x282   : > { %v1385_v63 = vpop.permute.xlu2 %1384 }
 0x283   : > { %v1390_v3 = vsel %vm1209_vm7, %v1385_v63, 0 }
 0x28a   : > { %v1327_v10 = vpop.permute.xlu2 %1326 }
 0x29a   : > { %v1270_v0 = vpop.permute.xlu0 %1269 }
 0x29b   : > { %v1275_v2 = vsel %vm1209_vm7, %v1270_v0, 0 }
 0x29c   : > { %1284 = vmatpush.bf16.xpose.msrb.mxu3 %v1275_v2 }
 0x2a2   : > { %v1265_v4 = vpop.permute.xlu1 %1264 }
 0x2a3   : > { %2029 = vmatmul.msk.bf16.vlgmr.msrb.gmra.mxu3 %vm1209_vm7, %v1265_v4 }
 0x2a4   : > { %1399 = vmatpush.bf16.xpose.msra.mxu3 %v1390_v3 }
 0x2a9   : > { %v1225_v5 = vpop.f32.mrf.mxu1 }
 0x2aa   : > { %v1329_v6 = vpop.permute.xlu1 %1328  ;;  %v1229_v7 = vsel %vm1209_vm7, %v1225_v5, -inf }
 0x2ab   : > { %v1334_v8 = vsel %vm1209_vm7, %v1329_v6, 0  ;;  %1230 = vmax.xlane.f32.xlu2 %v1229_v7 }
 0x2ac   : > { %1343 = vmatpush.bf16.xpose.msra.mxu1 %v1334_v8 }
 0x2b1   : > { %v1227_v9 = vpop.f32.mrf.mxu1 }
 0x2b2   : > { %v1383_v11 = vpop.permute.xlu1 %1382 }
 0x2b3   : > { %2031 = vmatmul.msk.bf16.vlgmr.msra.gmra.mxu1 %vm1209_vm7, %v1327_v10  ;;  %2033 = vmatmul.msk.bf16.vlgmr.msra.gmra.mxu3 %vm1209_vm7, %v1383_v11  ;;  %v2090_v11 = vld [vmem:[%s839_s14 + $0x8] sm:$0xff] }
 0x2b4   : > { %1481 = vmatpush.bf16.msrb.mxu1 %v2090_v11 }
 0x31e   : > { %v1231_v14 = vpop.xlane.xlu2 %1230 }
 0x31f   : > { %v1232_v15 = vsub.f32 %v1225_v5, %v1231_v14 }
 0x321   : > { %v1233_v20 = vmul.f32 1.442695, %v1232_v15 }
 0x323   : > { %2258 = vpow2.f32 %v1233_v20 }
 0x326   : > { %v1286_v12 = vpop.f32.mrf.mxu3 }
 0x327   : > { %v1290_v13 = vsel %vm1209_vm7, %v1286_v12, -inf }
 0x328   : > { %1291 = vmax.xlane.f32.xlu1 %v1290_v13 }
 0x329   : > { %v2259_v24 = vpop.eup %2258 }
 0x32a   : > { %v1235_v26 = vsel %vm1209_vm7, %v2259_v24, 0.0 }
 0x32e   : > { %v1288_v17 = vpop.f32.mrf.mxu3 }
 0x330   : > { %v1345_v18 = vpop.f32.mrf.mxu1 }
 0x331   : > { %v1349_v19 = vsel %vm1209_vm7, %v1345_v18, -inf }
 0x332   : > { %1350 = vmax.xlane.f32.xlu0 %v1349_v19 }
 0x336   : > { %v1401_v21 = vpop.f32.mrf.mxu3 }
 0x337   : > { %v1405_v22 = vsel %vm1209_vm7, %v1401_v21, -inf }
 0x338   : > { %1406 = vmax.xlane.f32.xlu2 %v1405_v22  ;;  %v1347_v23 = vpop.f32.mrf.mxu1 }
 0x33e   : > { %v1403_v25 = vpop.f32.mrf.mxu3 }
 0x340   : > { %1236 = vadd.xlane.f32.xlu2 %v1235_v26 }
 0x346   : > { %1305 = vrot.lane.b32.xlu0 %v1304_v28, %s2750_s19 }
 0x39b   : > { %v1292_v29 = vpop.xlane.xlu1 %1291 }
 0x39c   : > { %v1293_v30 = vsub.f32 %v1286_v12, %v1292_v29  ;;  %v2089_v12 = vld [vmem:[%s839_s14] sm:$0xff]  ;;  %v2094_v29 = vld [vmem:[%s868_s7 + $0x8] sm:$0xff] }
 0x39d   : > { %1482 = vmatpush.bf16.msrb.mxu1 %v2089_v12  ;;  %1579 = vmatpush.bf16.msrb.mxu3 %v2094_v29 }
 0x39e   : > { %v1294_v31 = vmul.f32 1.442695, %v1293_v30  ;;  %v2091_v30 = vld [vmem:[%s849_s15] sm:$0xff] }
 0x3a0   : > { %2260 = vpow2.f32 %v1294_v31  ;;  %v2093_v31 = vld [vmem:[%s868_s7] sm:$0xff] }
 0x3a1   : > { %1580 = vmatpush.bf16.msrb.mxu3 %v2093_v31 }
 0x3a5   : > { %v1351_v32 = vpop.xlane.xlu0 %1350 }
 0x3a6   : > { %v2261_v33 = vpop.eup %2260  ;;  %v1352_v34 = vsub.f32 %v1345_v18, %v1351_v32 }
 0x3a7   : > { %v1296_v35 = vsel %vm1209_vm7, %v2261_v33, 0.0 }
 0x3a8   : > { %v1353_v36 = vmul.f32 1.442695, %v1352_v34  ;;  %1297 = vadd.xlane.f32.xlu1 %v1296_v35 }
 0x3aa   : > { %2262 = vpow2.f32 %v1353_v36 }
 0x3ab   : > { %v1407_v37 = vpop.xlane.xlu2 %1406 }
 0x3ac   : > { %v1408_v39 = vsub.f32 %v1401_v21, %v1407_v37  ;;  %v2249_v21 = vld [vmem:[%s1009_s9] ss:$0 sm:$0xff] }
 0x3ae   : > { %v1409_v40 = vmul.f32 1.442695, %v1408_v39 }
 0x3b0   : > { %v2263_v38 = vpop.eup %2262  ;;  %2264 = vpow2.f32 %v1409_v40 }
 0x3b1   : > { %v1355_v41 = vsel %vm1209_vm7, %v2263_v38, 0.0 }
 0x3b2   : > { %1356 = vadd.xlane.f32.xlu2 %v1355_v41 }
 0x3b3   : > { %v1237_v42 = vpop.xlane.xlu2 %1236 }
 0x3b4   : > { %2266 = vrcp.f32 %v1237_v42 }
 0x3b6   : > { %v2265_v43 = vpop.eup %2264 }
 0x3b7   : > { %v1411_v44 = vsel %vm1209_vm7, %v2265_v43, 0.0 }
 0x3b8   : > { %1412 = vadd.xlane.f32.xlu1 %v1411_v44  ;;  %v1306_v45 = vpop.permute.xlu0 %1305  ;;  %v2096_v44 = vld [vmem:[%s887_s16 + $0x8] sm:$0xff] }
 0x3b9   : > { %v1311_v46 = vsel %vm1244_vm6, %v1306_v45, 0  ;;  %v2095_v45 = vld [vmem:[%s887_s16] sm:$0xff]  ;;  %s3361_s16 = sld [smem:[#allocation22_spill]] }
 0x3ba   : > { %v2267_v47 = vpop.eup %2266  ;;  %1320 = vmatpush.bf16.msra.mxu0 %v1311_v46  ;;  %v2252_v46 = vld [vmem:[%s877_s27] ss:$0 sm:$0xff] }
 0x3bb   : > { %v1239_v48 = vmul.f32 %v2267_v47, %v2259_v24 }
 0x3bd   : > { %v1240_v49 = vpack.c.bf16 %v1239_v48, %v1239_v48 }
 0x3bf   : > { %2028 = vmatmul.msk.bf16.vlgmr.msrb.gmra.mxu2 %vm1209_vm7, %v1240_v49  ;;  %p2071_p5 = scmp.ne.s32.totalorder %s3361_s16, 1 }
 0x3ca   : > { %1361 = vrot.lane.b32.xlu2 %v1304_v28, %s2751_s28 }
 0x3d1   : > { %1417 = vrot.lane.b32.xlu1 %v1304_v28, %s2749_s10  ;;  %v2092_v28 = vld [vmem:[%s849_s15 + $0x8] sm:$0xff] }
 0x41b   : > { %v1298_v50 = vpop.xlane.xlu1 %1297 }
 0x41c   : > { %2268 = vrcp.f32 %v1298_v50 }
 0x422   : > { %v2269_v51 = vpop.eup %2268 }
 0x423   : > { %v1300_v52 = vmul.f32 %v2269_v51, %v2261_v33 }
 0x425   : > { %v1301_v53 = vpack.c.bf16 %v1300_v52, %v1300_v52  ;;  %v1357_v54 = vpop.xlane.xlu2 %1356 }
 0x426   : > { %2270 = vrcp.f32 %v1357_v54 }
 0x427   : > { %2030 = vmatmul.msk.bf16.vlgmr.msra.gmra.mxu0 %vm1209_vm7, %v1301_v53 }
 0x42b   : > { %v1413_v60 = vpop.xlane.xlu1 %1412 }
 0x42c   : > { %v2271_v55 = vpop.eup %2270  ;;  %2272 = vrcp.f32 %v1413_v60 }
 0x42d   : > { %v1359_v56 = vmul.f32 %v2271_v55, %v2263_v38  ;;  %v1362_v57 = vpop.permute.xlu2 %1361  ;;  %v2250_v38 = vld [vmem:[%s1012_s20] ss:$0 sm:$0xff] }
 0x42e   : > { %v1367_v58 = vsel %vm1244_vm6, %v1362_v57, 0 }
 0x42f   : > { %v1360_v59 = vpack.c.bf16 %v1359_v56, %v1359_v56  ;;  %1376 = vmatpush.bf16.msra.mxu2 %v1367_v58  ;;  %v2251_v58 = vld [vmem:[%s858_s8] ss:$0 sm:$0xff] }
 0x432   : > { %2032 = vmatmul.msk.bf16.vlgmr.msra.gmra.mxu2 %vm1209_vm7, %v1360_v59  ;;  %v2273_v61 = vpop.eup %2272 }
 0x433   : > { %v1415_v62 = vmul.f32 %v2273_v61, %v2265_v43  ;;  %1546 = vmatpush.bf16.msrb.mxu2 %v2092_v28 }
 0x435   : > { %v1416_v3 = vpack.c.bf16 %v1415_v62, %v1415_v62 }
 0x437   : > { %1547 = vmatpush.bf16.msrb.mxu2 %v2091_v30 }
 0x442   : > { %v1257_v63 = vpop.f32.mrf.mxu2 }
 0x443   : > { %v1418_v0 = vpop.permute.xlu1 %1417 }
 0x444   : > { %v1423_v2 = vsel %vm1244_vm6, %v1418_v0, 0 }
 0x445   : > { %1432 = vmatpush.bf16.msrb.mxu0 %v1423_v2  ;;  %v2253_v2 = vld [vmem:[%s896_s5] ss:$0 sm:$0xff] }
 0x448   : > { %2034 = vmatmul.msk.bf16.vlgmr.msrb.gmra.mxu0 %vm1209_vm7, %v1416_v3 }
 0x449   : > { %1622 = vmatpush.bf16.msra.mxu0 %v2096_v44 }
 0x44a   : > { %v1259_v4 = vpop.f32.mrf.mxu2 }
 0x44d   : > { %1623 = vmatpush.bf16.msra.mxu0 %v2095_v45 }
 0x4a4   : > { %v1322_v5 = vpop.f32.mrf.mxu0 }
 0x4a5   : > { %1439 = vrot.lane.b32.xlu0 %v1322_v5, %s2752_s25 }
 0x4ac   : > { %v1324_v6 = vpop.f32.mrf.mxu0 }
 0x4b5   : > { %v1378_v7 = vpop.f32.mrf.mxu2 }
 0x4b6   : > { %1443 = vrot.lane.b32.xlu0 %v1378_v7, %s2753_s2 }
 0x4bd   : > { %v1380_v8 = vpop.f32.mrf.mxu2 }
 0x4c5   : > { %v1434_v9 = vpop.f32.mrf.mxu0 }
 0x4c6   : > { %1447 = vrot.lane.b32.xlu2 %v1434_v9, %s2754_s22 }
 0x4cd   : > { %v1436_v10 = vpop.f32.mrf.mxu0 }
 0x517   : > { %v1440_v13 = vpop.permute.xlu0 %1439 }
 0x518   : > { %v1450_v14 = vsel %vm1209_vm7, %v1257_v63, %v1440_v13 }
 0x520   : > { %v1448_v17 = vpop.permute.xlu2 %1447 }
 0x528   : > { %v1444_v15 = vpop.permute.xlu0 %1443 }
 0x529   : > { %v1452_v18 = vsel %vm1451_vm8, %v1450_v14, %v1444_v15 }
 0x52a   : > { %v1454_v19 = vsel %vm1453_vm9, %v1452_v18, %v1448_v17 }
 0x52b   : > { %v1455_v20 = vpack.c.bf16 %v1454_v19, %v1454_v19 }
 0x52d   : > { %2043 = vmatmul.msk.bf16.vlgmr.msrb.gmra.mxu1 %vm1034_vm1, %v1455_v20 }
 0x5aa   : > { %v1484_v22 = vpop.f32.mrf.mxu1 }
 0x5ab   : > { %v1488_v23 = vadd.f32 %v1484_v22, %v3130_v1 }
 0x5ad   : > { %v1493_v24 = vadd.f32 %v2249_v21, %v1488_v23 }
 0x5af   : > { %v1495_v25 = vmul.f32 %v1493_v24, %v1493_v24 }
 0x5b1   : > { %v1496_v26 = vsel %vm1034_vm1, %v1495_v25, 0.0 }
 0x5b2   : > { %1497 = vadd.xlane.f32.xlu0 %v1496_v26  ;;  %v1486_v27 = vpop.f32.mrf.mxu1 }
 0x625   : > { %v1498_v1 = vpop.xlane.xlu0 %1497 }
 0x626   : > { %v1499_v32 = vmul.f32 %v1498_v1, %v3147_v16 }
 0x628   : > { %v1500_v33 = vmax.f32 %v1499_v32, 1e-16 }
 0x62a   : > { %2274 = vrsqrt.f32 %v1500_v33  ;;  %vm1507_vm11 = vweird.f32 %v1500_v33 }
 0x630   : > { %v2275_v34 = vpop.eup %2274 }
 0x631   : > { %v1502_v35 = vmul.f32 %v2275_v34, %v1500_v33  ;;  %vm1508_vm10 = vweird.f32 %v2275_v34 }
 0x632   : > { %vm1509_vm12 = vmor %vm1507_vm11, %vm1508_vm10 }
 0x633   : > { %v1503_v36 = vmul.f32 %v2275_v34, %v1502_v35 }
 0x635   : > { %v1504_v37 = vmul.f32 0.5, %v1503_v36 }
 0x637   : > { %v1505_v39 = vsub.f32 1.5, %v1504_v37 }
 0x639   : > { %v1506_v40 = vmul.f32 %v2275_v34, %v1505_v39 }
 0x63b   : > { %v1510_v16 = vsel %vm1509_vm12, %v2275_v34, %v1506_v40 }
 0x63c   : > { %v1511_v41 = vmul.f32 %v1510_v16, %v1493_v24 }
 0x63e   : > { %v1515_v42 = vmul.f32 %v2250_v38, %v1511_v41 }
 0x640   : > { %v1516_v43 = vpack.c.bf16 %v1515_v42, %v1515_v42 }
 0x642   : > { %2052 = vmatmul.msk.bf16.vlgmr.msrb.gmra.mxu2 %vm1034_vm1, %v1516_v43  ;;  %2061 = vmatmul.msk.bf16.vlgmr.msrb.gmra.mxu3 %vm1034_vm1, %v1516_v43 }
 0x6c5   : > { %v1549_v47 = vpop.f32.mrf.mxu2  ;;  %v1582_v48 = vpop.f32.mrf.mxu3 }
 0x6c6   : > { %v1583_v49 = vadd.f32 %v2252_v46, %v1582_v48  ;;  %v1550_v61 = vadd.f32 %v2251_v58, %v1549_v47 }
 0x6c8   : > { %v1586_v50 = vmul.f32 %v1583_v49, %v1583_v49 }
 0x6ca   : > { %v1587_v51 = vmul.f32 %v1586_v50, %v1583_v49 }
 0x6cc   : > { %v1588_v52 = vmul.f32 0.044715, %v1587_v51 }
 0x6cd   : > { %v1551_v53 = vpop.f32.mrf.mxu2  ;;  %v1584_v54 = vpop.f32.mrf.mxu3 }
 0x6ce   : > { %v1589_v55 = vadd.f32 %v1588_v52, %v1583_v49 }
 0x6d0   : > { %v1590_v56 = vmul.f32 0.7978846, %v1589_v55 }
 0x6d2   : > { %2276 = vtanh.f32 %v1590_v56 }
 0x6d8   : > { %v2277_v57 = vpop.eup %2276 }
 0x6d9   : > { %v1592_v59 = vadd.f32 1.0, %v2277_v57 }
 0x6db   : > { %v1593_v60 = vmul.f32 0.5, %v1592_v59 }
 0x6dd   : > { %v1594_v62 = vmul.f32 %v1593_v60, %v1583_v49 }
 0x6df   : > { %v1595_v63 = vmul.f32 %v1594_v62, %v1550_v61 }
 0x6e1   : > { %v1596_v0 = vpack.c.bf16 %v1595_v63, %v1595_v63 }
 0x6e3   : > { %2070 = vmatmul.msk.bf16.vlgmr.msra.gmra.mxu0 %vm1034_vm1, %v1596_v0 }
 0x760   : > { %v1625_v3 = vpop.f32.mrf.mxu0 }
 0x761   : > { %v1629_v4 = vadd.f32 %v1625_v3, %v1493_v24 }
 0x763   : > { %v1634_v5 = vadd.f32 %v2253_v2, %v1629_v4 }
 0x764   : > { %1639 = sbr.rel (%p2071_p5) target bundleno = 1898 (0x76a), region = 148 }
 0x765   : > { %1635 = vst.msk [vmem:[#allocation2] sm:$0xff] %vm1034_vm1, %v1634_v5 }
 0x768   : > { %v1627_v6 = vpop.f32.mrf.mxu0 }
 0x769   : > { %1640 = vst.msk [vmem:[%s3117_s11] sm:$0xff] %vm1034_vm1, %v1634_v5 }
 0x76a PF: > { %s3362_s6 = sld [smem:[#allocation24_spill]]  ;;  %s3366_s25 = smov %s2722_s26 }
 0x76b   : > { %s3363_s24 = sld [smem:[#allocation21_spill]]  ;;  %s3367_s26 = smov %s2952_s30 }
 0x76c   : > { %s3364_s18 = sld [smem:[#allocation28_spill]]  ;;  %s3368_s27 = smov %s2734_s29 }
 0x76d   : > { %s3365_s20 = sld [smem:[#allocation29_spill]]  ;;  %s3369_s28 = smov %s2738_s0 }
 0x770   : > { %s29_s21 = sadd.s32 1, %s3362_s6  }
 0x771   : > { %p26_p6 = scmp.ge.s32.totalorder %s29_s21, 6   ;;  %s3372_s30 = smov %s29_s21 }
 0x772   : > { %s3370_s29 = smov %s3364_s18 }
 0x773   : > { %s3371_s0 = smov %s3365_s20  ;;  %28 = sbr.rel (!%p26_p6) target bundleno = 24 (0x18), region = 262 }
 0x778   :  { %1660 = vsyncpa [#allocation4], 1 }
 0x779   :  { %1662 = vsyncpa [#allocation4 + $0x1], 1 }
 0x77a   :  { %1663 = vsyncpa [#allocation6], 1 }

// kernel: collapsing_transformer_forward.3
= control target key start
LH: loop header
LB: loop body
LE: loop exit
PB: predicated region body
PF: predicated region fallthrough
CT: control target
= control target key end

     0   :  { %s3160_s0 = inlined_call_operand.vmem [shape: f32[2,8,32], index: 0, kind: input, shape index: {}]   ;;  %s3161_s1 = inlined_call_operand.vmem [shape: f32[1,32], index: 1, kind: input, shape index: {}]   ;;  %s3162_s2 = inlined_call_operand.hbm [shape: f32[1,32], index: 2, kind: input, shape index: {}]   ;;  %s3163_s3 = inlined_call_operand.hbm [shape: bf16[32,64], index: 3, kind: input, shape index: {}]   ;;  %s3164_s4 = inlined_call_operand.hbm [shape: f32[1,64], index: 4, kind: input, shape index: {}]   ;;  %s3165_s5 = inlined_call_operand.hbm [shape: f32[1,64], index: 5, kind: input, shape index: {}]   ;;  %s3166_s6 = inlined_call_operand.hbm [shape: f32[1,64], index: 6, kind: input, shape index: {}]   ;;  %s3167_s7 = inlined_call_operand.hbm [shape: f32[64,64], index: 7, kind: input, shape index: {}]   ;;  %s3168_s8 = inlined_call_operand.hbm [shape: bf16[64,64], index: 8, kind: input, shape index: {}]   ;;  %s3169_s9 = inlined_call_operand.hbm [shape: f32[1,64], index: 9, kind: input, shape index: {}]   ;;  %s3170_s10 = inlined_call_operand.hbm [shape: bf16[64,64], index: 10, kind: input, shape index: {}]   ;;  %s3171_s11 = inlined_call_operand.hbm [shape: f32[1,64], index: 11, kind: input, shape index: {}]   ;;  %s3172_s12 = inlined_call_operand.hbm [shape: bf16[64,64], index: 12, kind: input, shape index: {}]   ;;  %s3173_s13 = inlined_call_operand.hbm [shape: f32[1,64], index: 13, kind: input, shape index: {}]   ;;  %s3174_s14 = inlined_call_operand.hbm [shape: bf16[64,64], index: 14, kind: input, shape index: {}]   ;;  %s3175_s15 = inlined_call_operand.hbm [shape: f32[1,64], index: 15, kind: input, shape index: {}]   ;;  %s3176_s16 = inlined_call_operand.hbm [shape: bf16[64,64], index: 16, kind: input, shape index: {}]   ;;  %s3177_s17 = inlined_call_operand.hbm [shape: f32[1,64], index: 17, kind: input, shape index: {}]   ;;  %s3178_s18 = inlined_call_operand.hbm [shape: f32[2,1,64], index: 18, kind: output, shape index: {}]  }
   0x1   :  { %3193 = sst [smem:[#allocation47_spill]] %s3160_s0 }
   0x2   :  { %3194 = sst [smem:[#allocation48_spill]] %s3161_s1 }
   0x3   :  { %3195 = sst [smem:[#allocation49_spill]] %s3162_s2 }
   0x4   :  { %3196 = sst [smem:[#allocation50_spill]] %s3163_s3 }
   0x5   :  { %3197 = sst [smem:[#allocation51_spill]] %s3165_s5 }
   0x6   :  { %3198 = sst [smem:[#allocation52_spill]] %s3178_s18 }
   0x7   :  { %23 = vsyncpa [#allocation3], 0 }
   0x8   :  { %24 = vsyncpa [#allocation6], 0 }
   0x9   :  { %25 = vsyncpa [#allocation9], 0 }
   0xa   :  { %26 = vsyncpa [#allocation12], 0 }
   0xb   :  { %27 = vsyncpa [#allocation15], 0 }
   0xc   :  { %28 = vsyncpa [#allocation18], 0 }
   0xd   :  { %29 = vsyncpa [#allocation21], 0 }
   0xe   :  { %30 = vsyncpa [#allocation24], 0 }
   0xf   :  { %31 = vsyncpa [#allocation27], 0 }
  0x10   :  { %32 = vsyncpa [#allocation4], 0 }
  0x11   :  { %34 = vsyncpa [#allocation4 + $0x1], 0  ;;  %s2859_s27 = smov 0   ;;  %s2861_s28 = smov 0  }
  0x12   :  { %s2863_s29 = smov 0   ;;  %s2865_s30 = smov 0  }
  0x13 LB: > { %3199 = sst [smem:[#allocation39_spill]] %s2722_s27  ;;  %s2880_s0 = sadd.s32 4294967295, %s2734_s30   ;;  %s2734_s30 = sphi %s2865_s30, %s3224_s30   ;;  %s2730_s29 = sphi %s2863_s29, %s3227_s29   ;;  %s2726_s28 = sphi %s2861_s28, %s3226_s28   ;;  %s2722_s27 = sphi %s2859_s27, %s3225_s27  }
  0x14   : > { %3200 = sst [smem:[#allocation40_spill]] %s2726_s28  ;;  %s1745_s19 = sadd.s32 4294967294, %s2734_s30  }
  0x15   : > { %3201 = sst [smem:[#allocation41_spill]] %s2730_s29  ;;  %s2884_s1 = sadd.s32 1, %s2734_s30  }
  0x16   : > { %3202 = sst [smem:[#allocation42_spill]] %s2734_s30  ;;  %s430_s20 = sadd.s32 1, %s2730_s29 }
  0x17   : > { %3203 = sst [smem:[#allocation43_spill]] %s2884_s1  ;;  %s427_s21 = ssub.s32 %s2734_s30, %s2884_s1 }
  0x18   : > { %p440_p0 = scmp.ne.s32.totalorder %s2730_s29, %s2726_s28  ;;  %p428_p1 = scmp.eq.s32.totalorder %s427_s21, 0 }
  0x19   : > { %p441_p2 = scmp.eq.s32.totalorder %s2880_s0, 1  ;;  %p446_p3 = scmp.ne.s32.totalorder %s2726_s28, %s2722_s27 }
  0x1a   : > { %p447_p4 = scmp.eq.s32.totalorder %s1745_s19, 1  ;;  %p1746_p7 = scmp.ge.s32.totalorder %s2734_s30, 1 }
  0x1b   : > { %s2895_s22 = scalar_select %p428_p1, %s2730_s29, %s430_s20  }
  0x1c   : > { %p2897_p5 = por %p441_p2, %p440_p0  ;;  %p2901_p6 = por %p447_p4, %p446_p3 }
  0x1d   : > { %3204 = sst [smem:[#allocation44_spill]] %s2895_s22  ;;  %p454_p8 = scmp.lt.s32.totalorder %s2734_s30, 3 }
  0x1e   : > { %s3205_s2 = scalar_select %p2897_p5, 1, 0 }
  0x1f   : > { %s3207_s23 = scalar_select %p2901_p6, 1, 0 }
  0x20   : > { %3206 = sst [smem:[#allocation45_spill]] %s3205_s2  ;;  %p2029_p9 = scmp.eq.s32.totalorder %s2880_s0, 0 }
  0x21   : > { %3208 = sst [smem:[#allocation46_spill]] %s3207_s23  ;;  %p2908_p10 = pnand %p1746_p7, %p454_p8 }
  0x22   : > { %s3210_s3 = sld [smem:[#allocation50_spill]]  ;;  %s2736_s20 = smov [#allocation5]  }
  0x23   : > { %p1976_p11 = pneg %p2908_p10  ;;  %s482_s21 = sshll.u32 %s2736_s20, 4  ;;  %s483_s21 = int_to_ptr.vmem [resolvable:$true] %s482_s21 }
  0x24   : > { %s3212_s5 = sld [smem:[#allocation51_spill]]  ;;  %s3189_s25 = smov 64  }
  0x25   : > { %p2919_p12 = pnand %p2029_p9, %p1976_p11  ;;  %s3191_s26 = smov 4  }
  0x26   : > { %s2739_s20 = smov [#allocation8]   ;;  %s530_s2 = sshll.u32 %s3167_s7, 4  ;;  %s531_s2 = int_to_ptr.hbm [resolvable:$true] %s530_s2 }
  0x27   : > { %s2740_s29 = smov [#allocation11]   ;;  %s559_s28 = sshll.u32 %s3169_s9, 4  ;;  %s560_s28 = int_to_ptr.hbm [resolvable:$true] %s559_s28 }
  0x28   : > { %s480_s19 = sshll.u32 %s3210_s3, 4  ;;  %s509_s3 = sshll.u32 %s2739_s20, 4  ;;  %s481_s19 = int_to_ptr.hbm [resolvable:$true] %s480_s19  ;;  %s510_s3 = int_to_ptr.vmem [resolvable:$true] %s509_s3 }
  0x29   : > { %1982 = dma.hbm_to_vmem [thread:$0]  (!%p2919_p12), %s481_s19, 256, %s483_s21, [#allocation6], %s3189_s25, %s3189_s25, %s3191_s26  }
  0x2a   : > { %s507_s23 = sshll.u32 %s3212_s5, 4  ;;  %s532_s1 = sshll.u32 %s2740_s29, 4  ;;  %s508_s23 = int_to_ptr.hbm [resolvable:$true] %s507_s23  ;;  %s533_s1 = int_to_ptr.vmem [resolvable:$true] %s532_s1 }
  0x2b   : > { %1988 = dma.hbm_to_vmem [thread:$0]  (!%p2919_p12), %s508_s23, 16, %s510_s3, [#allocation9]  }
  0x2c   : > { %s2741_s19 = smov 128   ;;  %s2742_s21 = smov 8  }
  0x2d   : > { %1994 = dma.hbm_to_vmem [thread:$0]  (!%p2919_p12), %s531_s2, 1024, %s533_s1, [#allocation12], %s2741_s19, %s2741_s19, %s2742_s21  }
  0x2e   : > { %s2743_s27 = smov [#allocation14]   ;;  %s585_s3 = sshll.u32 %s3171_s11, 4  ;;  %s586_s3 = int_to_ptr.hbm [resolvable:$true] %s585_s3 }
  0x2f   : > { %s561_s30 = sshll.u32 %s2743_s27, 4  ;;  %s611_s18 = sshll.u32 %s3173_s13, 4  ;;  %s562_s30 = int_to_ptr.vmem [resolvable:$true] %s561_s30  ;;  %s612_s18 = int_to_ptr.hbm [resolvable:$true] %s611_s18 }
  0x30   : > { %2000 = dma.hbm_to_vmem [thread:$0]  (!%p2919_p12), %s560_s28, 16, %s562_s30, [#allocation15]  }
  0x31   : > { %s2744_s29 = smov [#allocation17]   ;;  %s2745_s2 = smov [#allocation20]  }
  0x32   : > { %s587_s26 = sshll.u32 %s2744_s29, 4  ;;  %s613_s1 = sshll.u32 %s2745_s2, 4  ;;  %s588_s26 = int_to_ptr.vmem [resolvable:$true] %s587_s26  ;;  %s614_s1 = int_to_ptr.vmem [resolvable:$true] %s613_s1 }
  0x33   : > { %2006 = dma.hbm_to_vmem [thread:$0]  (!%p2919_p12), %s586_s3, 16, %s588_s26, [#allocation18]  }
  0x34   : > { %s637_s21 = sshll.u32 %s3175_s15, 4  ;;  %s3213_s30 = sld [smem:[#allocation49_spill]]  ;;  %s638_s21 = int_to_ptr.hbm [resolvable:$true] %s637_s21 }
  0x35   : > { %2012 = dma.hbm_to_vmem [thread:$0]  (!%p2919_p12), %s612_s18, 16, %s614_s1, [#allocation21]  }
  0x36   : > { %s2746_s23 = smov [#allocation23]   ;;  %s2747_s26 = smov [#allocation2]  }
  0x37   : > { %s639_s5 = sshll.u32 %s2746_s23, 4  ;;  %s471_s3 = sshll.u32 %s2747_s26, 4  ;;  %s640_s5 = int_to_ptr.vmem [resolvable:$true] %s639_s5  ;;  %s472_s3 = int_to_ptr.vmem [resolvable:$true] %s471_s3 }
  0x38   : > { %2018 = dma.hbm_to_vmem [thread:$0]  (!%p2919_p12), %s638_s21, 16, %s640_s5, [#allocation24]  }
  0x39   : > { %s495_s25 = sshll.u32 %s3164_s4, 4  ;;  %s519_s19 = sshll.u32 %s3166_s6, 4  ;;  %s496_s25 = int_to_ptr.hbm [resolvable:$true] %s495_s25  ;;  %s520_s19 = int_to_ptr.hbm [resolvable:$true] %s519_s19 }
  0x3a   : > { %s469_s20 = sshll.u32 %s3213_s30, 4  ;;  %s2748_s28 = smov [#allocation7]   ;;  %s470_s20 = int_to_ptr.hbm [resolvable:$true] %s469_s20 }
  0x3b   : > { %1979 = dma.hbm_to_vmem [thread:$0]  (!%p2919_p12), %s470_s20, 16, %s472_s3, [#allocation3]  }
  0x3c   : > { %s497_s27 = sshll.u32 %s2748_s28, 4  ;;  %s2749_s21 = smov [#allocation10]   ;;  %s498_s27 = int_to_ptr.vmem [resolvable:$true] %s497_s27 }
  0x3d   : > { %1985 = dma.hbm_to_vmem [thread:$0]  (!%p2919_p12), %s496_s25, 16, %s498_s27, [#allocation6]  }
  0x3e   : > { %s521_s30 = sshll.u32 %s2749_s21, 4  ;;  %s544_s26 = sshll.u32 %s3168_s8, 4  ;;  %s522_s30 = int_to_ptr.vmem [resolvable:$true] %s521_s30  ;;  %s545_s26 = int_to_ptr.hbm [resolvable:$true] %s544_s26 }
  0x3f   : > { %1991 = dma.hbm_to_vmem [thread:$0]  (!%p2919_p12), %s520_s19, 16, %s522_s30, [#allocation9]  }
  0x40   : > { %s570_s29 = sshll.u32 %s3170_s10, 4  ;;  %s2750_s2 = smov [#allocation13]   ;;  %s571_s29 = int_to_ptr.hbm [resolvable:$true] %s570_s29 }
  0x41   : > { %s546_s18 = sshll.u32 %s2750_s2, 4  ;;  %s3214_s25 = smov 4   ;;  %s547_s18 = int_to_ptr.vmem [resolvable:$true] %s546_s18 }
  0x42   : > { %s3215_s1 = smov 64   ;;  %s2751_s28 = smov [#allocation16]  }
  0x43   : > { %1997 = dma.hbm_to_vmem [thread:$0]  (!%p2919_p12), %s545_s26, 512, %s547_s18, [#allocation12], %s3215_s1, %s3215_s1, %s3214_s25  }
  0x44   : > { %s572_s27 = sshll.u32 %s2751_s28, 4  ;;  %s596_s19 = sshll.u32 %s3172_s12, 4  ;;  %s573_s27 = int_to_ptr.vmem [resolvable:$true] %s572_s27  ;;  %s597_s19 = int_to_ptr.hbm [resolvable:$true] %s596_s19 }
  0x45   : > { %2003 = dma.hbm_to_vmem [thread:$0]  (!%p2919_p12), %s571_s29, 512, %s573_s27, [#allocation15], %s3215_s1, %s3215_s1, %s3214_s25  }
  0x46   : > { %s622_s20 = sshll.u32 %s3174_s14, 4  ;;  %s2752_s3 = smov [#allocation19]   ;;  %s623_s20 = int_to_ptr.hbm [resolvable:$true] %s622_s20 }
  0x47   : > { %s598_s26 = sshll.u32 %s2752_s3, 4  ;;  %s2753_s2 = smov [#allocation22]   ;;  %s599_s26 = int_to_ptr.vmem [resolvable:$true] %s598_s26 }
  0x48   : > { %2009 = dma.hbm_to_vmem [thread:$0]  (!%p2919_p12), %s597_s19, 512, %s599_s26, [#allocation18], %s3215_s1, %s3215_s1, %s3214_s25  }
  0x49   : > { %s624_s18 = sshll.u32 %s2753_s2, 4  ;;  %s648_s29 = sshll.u32 %s3176_s16, 4  ;;  %s625_s18 = int_to_ptr.vmem [resolvable:$true] %s624_s18  ;;  %s649_s29 = int_to_ptr.hbm [resolvable:$true] %s648_s29 }
  0x4a   : > { %2015 = dma.hbm_to_vmem [thread:$0]  (!%p2919_p12), %s623_s20, 512, %s625_s18, [#allocation21], %s3215_s1, %s3215_s1, %s3214_s25  }
  0x4b   : > { %s663_s30 = sshll.u32 %s3177_s17, 4  ;;  %s2754_s5 = smov [#allocation25]   ;;  %s664_s30 = int_to_ptr.hbm [resolvable:$true] %s663_s30 }
  0x4c   : > { %s650_s19 = sshll.u32 %s2754_s5, 4  ;;  %s2755_s3 = smov [#allocation26]   ;;  %s651_s19 = int_to_ptr.vmem [resolvable:$true] %s650_s19 }
  0x4d   : > { %2021 = dma.hbm_to_vmem [thread:$0]  (!%p2919_p12), %s649_s29, 512, %s651_s19, [#allocation24], %s3215_s1, %s3215_s1, %s3214_s25  }
  0x4e   : > { %s665_s26 = sshll.u32 %s2755_s3, 4  ;;  %685 = sbr.rel (%p2908_p10) target bundleno = 1892 (0x764), region = 92  ;;  %s666_s26 = int_to_ptr.vmem [resolvable:$true] %s665_s26 }
  0x4f   : > { %2024 = dma.hbm_to_vmem [thread:$0]  (!%p2919_p12), %s664_s30, 16, %s666_s26, [#allocation27]  }
  0x53   : > { %2681 = dma.done.wait (%p2029_p9), [#allocation3], 16  }
  0x54   : > { %2683 = vsyncadd (%p2029_p9), [#allocation3], 4294967280 }
  0x55   : > { %2685 = dma.done.wait (%p2029_p9), [#allocation6], 272  }
  0x56   : > { %2687 = vsyncadd (%p2029_p9), [#allocation6], 4294967024 }
  0x57   : > { %2689 = dma.done.wait (%p2029_p9), [#allocation9], 32  }
  0x58   : > { %2691 = vsyncadd (%p2029_p9), [#allocation9], 4294967264 }
  0x59   : > { %2693 = dma.done.wait (%p2029_p9), [#allocation12], 1536  }
  0x5a   : > { %2695 = vsyncadd (%p2029_p9), [#allocation12], 4294965760 }
  0x5b   : > { %2697 = dma.done.wait (%p2029_p9), [#allocation15], 528  }
  0x5c   : > { %2699 = vsyncadd (%p2029_p9), [#allocation15], 4294966768 }
  0x5d   : > { %2701 = dma.done.wait (%p2029_p9), [#allocation18], 528  }
  0x5e   : > { %2703 = vsyncadd (%p2029_p9), [#allocation18], 4294966768 }
  0x5f   : > { %2705 = dma.done.wait (%p2029_p9), [#allocation21], 528  }
  0x60   : > { %2707 = vsyncadd (%p2029_p9), [#allocation21], 4294966768 }
  0x61   : > { %2709 = dma.done.wait (%p2029_p9), [#allocation24], 528  }
  0x62   : > { %2711 = vsyncadd (%p2029_p9), [#allocation24], 4294966768 }
  0x63   : > { %2713 = dma.done.wait (%p2029_p9), [#allocation27], 16  }
  0x64   : > { %2715 = vsyncadd (%p2029_p9), [#allocation27], 4294967280  ;;  %p813_p13 = scmp.lt.s32.totalorder %s2880_s0, 1  ;;  %s3216_s20 = sld [smem:[#allocation47_spill]]  ;;  %vm819_vm0 = vcmask 261120   ;;  %v2756_v2 = vmov 32.0  }
  0x65   : > { %2132 = vrcp.f32 %v2756_v2  ;;  %v1889_v14 = vld [vmem:[#allocation5 + $0x8] sm:$0xff]  ;;  %v1888_v15 = vld [vmem:[#allocation5] sm:$0xff]  ;;  %s3217_s21 = sld [smem:[#allocation48_spill]]  ;;  %v2123_v28 = vld [vmem:[#allocation2] ss:$0 sm:$0xff]  ;;  %v2757_v40 = vmov 8.0  }
  0x66   : > { %s814_s22 = scalar_select %p813_p13, %s2880_s0, 1  ;;  %889 = vmatpush.bf16.msra.mxu0 %v1889_v14  ;;  %v928_v32 = vld [vmem:[#allocation11 + $0x38] sm:$0xff]  ;;  %v927_v33 = vld [vmem:[#allocation11 + $0x30] sm:$0xff]  ;;  %v926_v34 = vld [vmem:[#allocation11 + $0x28] sm:$0xff]  ;;  %vm896_vm5 = vcmask 523264   ;;  %vm1158_vm10 = vcmask 130048  }
  0x67   : > { %940 = vmatpush.msra.mxu1 %v928_v32  ;;  %963 = vmatpush.msra.mxu2 %v928_v32  ;;  %v925_v35 = vld [vmem:[#allocation11 + $0x20] sm:$0xff]  ;;  %v924_v36 = vld [vmem:[#allocation11 + $0x18] sm:$0xff]  ;;  %v923_v37 = vld [vmem:[#allocation11 + $0x10] sm:$0xff]  ;;  %vm1194_vm11 = vcmask 1043456   ;;  %s2758_s29 = smov 96   ;;  %s2759_s27 = smov 112  }
  0x68   : > { %s1781_s24 = sshll.u32 %s814_s22, 3  ;;  %v922_v38 = vld [vmem:[#allocation11 + $0x8] sm:$0xff]  ;;  %v921_v39 = vld [vmem:[#allocation11] sm:$0xff]  ;;  %v2124_v42 = vld [vmem:[#allocation7] ss:$0 sm:$0xff]  ;;  %s2760_s23 = smov 80  }
  0x69   : > { %941 = vmatpush.msra.mxu1 %v927_v33  ;;  %964 = vmatpush.msra.mxu2 %v927_v33  ;;  %v1890_v14 = vld [vmem:[#allocation13] sm:$0xff]  ;;  %v2125_v32 = vld [vmem:[#allocation8] ss:$0 sm:$0xff]  ;;  %vm1178_vm12 = vcmask 64512   ;;  %s2761_s30 = smov 16   ;;  %s2762_s5 = smov 32  }
  0x6a   : > { %s816_s2 = scalar_lea.vmem %s3216_s20, %s1781_s24  ;;  %890 = vmatpush.bf16.msra.mxu0 %v1888_v15  ;;  %v1894_v15 = vld [vmem:[#allocation16] sm:$0xff]  ;;  %s2763_s19 = smov 48   ;;  %vm1402_vm13 = vcmask 392192   ;;  %vm1520_vm14 = vcmask 516096  }
  0x6b   : > { %v818_v0 = vld [vmem:[%s816_s2] sm:$0xff]  ;;  %v2133_v3 = vpop.eup %2132  ;;  %942 = vmatpush.msra.mxu1 %v926_v34  ;;  %965 = vmatpush.msra.mxu2 %v926_v34  ;;  %s3218_s3 = sld [smem:[#allocation40_spill]] }
  0x6c   : > { %v820_v1 = vsel %vm819_vm0, %v818_v0, 0.0  ;;  %v824_v4 = vmul.f32 32.0, %v2133_v3  ;;  %vm828_vm1 = vweird.f32 %v2133_v3  ;;  %v2122_v25 = vld [vmem:[%s3217_s21] ss:$0 sm:$0xff]  ;;  %v2126_v34 = vld [vmem:[#allocation10] ss:$0 sm:$0xff] }
  0x6d   : > { %821 = vadd.xlane.f32.xlu0 %v820_v1  ;;  %943 = vmatpush.msra.mxu1 %v925_v35  ;;  %s3219_s25 = sld [smem:[#allocation52_spill]] }
  0x6e   : > { %v825_v5 = vsub.f32 1.0, %v824_v4  ;;  %966 = vmatpush.msra.mxu2 %v925_v35  ;;  %v1893_v4 = vld [vmem:[#allocation13 + $0x18] sm:$0xff] }
  0x6f   : > { %944 = vmatpush.msra.mxu1 %v924_v36  ;;  %1047 = vmatpush.bf16.msra.mxu3 %v1893_v4 }
  0x70   : > { %v826_v6 = vmul.f32 %v2133_v3, %v825_v5  ;;  %967 = vmatpush.msra.mxu2 %v924_v36  ;;  %v1897_v5 = vld [vmem:[#allocation16 + $0x18] sm:$0xff] }
  0x71   : > { %945 = vmatpush.msra.mxu1 %v923_v37  ;;  %1096 = vmatpush.bf16.msrb.mxu0 %v1897_v5  ;;  %s811_s26 = sand.u32 1, %s3218_s3  }
  0x72   : > { %v827_v7 = vadd.f32 %v2133_v3, %v826_v6  ;;  %968 = vmatpush.msra.mxu2 %v923_v37  ;;  %v1901_v6 = vld [vmem:[#allocation19 + $0x18] sm:$0xff]  ;;  %s812_s2 = scalar_lea.vmem [#allocation28], %s811_s26  ;;  %s1523_s21 = scalar_lea.sflag [#allocation4], %s811_s26 }
  0x73   : > { %946 = vmatpush.msra.mxu1 %v922_v38  ;;  %s1531_s1 = scalar_lea.hbm %s3219_s25, %s2880_s0  ;;  %s1533_s18 = sshll.u32 %s812_s2, 4  ;;  %s1534_s18 = int_to_ptr.vmem [resolvable:$true] %s1533_s18 }
  0x74   : > { %v829_v8 = vsel %vm828_vm1, %v2133_v3, %v827_v7  ;;  %969 = vmatpush.msra.mxu2 %v922_v38  ;;  %v1892_v7 = vld [vmem:[#allocation13 + $0x10] sm:$0xff]  ;;  %v2127_v38 = vld [vmem:[#allocation17] ss:$0 sm:$0xff]  ;;  %s1535_s28 = sshll.u32 %s1531_s1, 4  ;;  %s1536_s28 = int_to_ptr.hbm [resolvable:$true] %s1535_s28 }
  0x75   : > { %947 = vmatpush.msra.mxu1 %v921_v39  ;;  %1048 = vmatpush.bf16.msra.mxu3 %v1892_v7 }
  0x76   : > { %970 = vmatpush.msra.mxu2 %v921_v39  ;;  %v2128_v39 = vld [vmem:[#allocation20] ss:$0 sm:$0xff] }
  0x77   : > { %1145 = vmatpush.bf16.msrb.mxu1 %v1901_v6 }
  0xe0   : > { %v822_v9 = vpop.xlane.xlu0 %821 }
  0xe1   : > { %v830_v10 = vmul.f32 %v829_v8, %v822_v9  ;;  %v1900_v9 = vld [vmem:[#allocation19 + $0x10] sm:$0xff] }
  0xe2   : > { %1146 = vmatpush.bf16.msrb.mxu1 %v1900_v9 }
  0xe3   : > { %v831_v11 = vsub.f32 %v818_v0, %v830_v10  ;;  %v1891_v10 = vld [vmem:[#allocation13 + $0x8] sm:$0xff] }
  0xe4   : > { %1049 = vmatpush.bf16.msra.mxu3 %v1891_v10 }
  0xe5   : > { %v832_v12 = vmul.f32 %v831_v11, %v831_v11 }
  0xe7   : > { %v833_v13 = vsel %vm819_vm0, %v832_v12, 0.0  ;;  %v1899_v12 = vld [vmem:[#allocation19 + $0x8] sm:$0xff] }
  0xe8   : > { %834 = vadd.xlane.f32.xlu0 %v833_v13  ;;  %1147 = vmatpush.bf16.msrb.mxu1 %v1899_v12 }
  0xe9   : > { %1050 = vmatpush.bf16.msra.mxu3 %v1890_v14 }
 0x15b   : > { %v835_v16 = vpop.xlane.xlu0 %834 }
 0x15c   : > { %v836_v17 = vmul.f32 %v835_v16, %v829_v8  ;;  %v1896_v8 = vld [vmem:[#allocation16 + $0x10] sm:$0xff]  ;;  %v1898_v16 = vld [vmem:[#allocation19] sm:$0xff] }
 0x15d   : > { %1097 = vmatpush.bf16.msrb.mxu0 %v1896_v8  ;;  %1148 = vmatpush.bf16.msrb.mxu1 %v1898_v16 }
 0x15e   : > { %v837_v18 = vadd.f32 1e-05, %v836_v17 }
 0x160   : > { %2134 = vrsqrt.f32 %v837_v18  ;;  %vm844_vm3 = vweird.f32 %v837_v18 }
 0x161   : > { %2136 = vrcp.f32 %v2757_v40 }
 0x166   : > { %v2135_v19 = vpop.eup %2134 }
 0x167   : > { %v839_v20 = vmul.f32 %v2135_v19, %v837_v18  ;;  %vm845_vm2 = vweird.f32 %v2135_v19  ;;  %v2137_v41 = vpop.eup %2136 }
 0x168   : > { %vm846_vm4 = vmor %vm844_vm3, %vm845_vm2  ;;  %v905_v43 = vmul.f32 8.0, %v2137_v41  ;;  %vm909_vm6 = vweird.f32 %v2137_v41 }
 0x169   : > { %v840_v21 = vmul.f32 %v2135_v19, %v839_v20 }
 0x16a   : > { %v906_v46 = vsub.f32 1.0, %v905_v43 }
 0x16b   : > { %v841_v22 = vmul.f32 0.5, %v840_v21 }
 0x16c   : > { %v907_v51 = vmul.f32 %v2137_v41, %v906_v46  ;;  %v2129_v46 = vld [vmem:[#allocation14] ss:$0 sm:$0xff] }
 0x16d   : > { %v842_v23 = vsub.f32 1.5, %v841_v22 }
 0x16e   : > { %v908_v57 = vadd.f32 %v2137_v41, %v907_v51 }
 0x16f   : > { %v843_v24 = vmul.f32 %v2135_v19, %v842_v23 }
 0x170   : > { %v3074_v62 = vsel %vm909_vm6, %v2137_v41, %v908_v57 }
 0x171   : > { %v847_v26 = vsel %vm846_vm4, %v2135_v19, %v843_v24 }
 0x172   : > { %v848_v27 = vmul.f32 %v847_v26, %v831_v11  ;;  %v1895_v11 = vld [vmem:[#allocation16 + $0x8] sm:$0xff] }
 0x173   : > { %1098 = vmatpush.bf16.msrb.mxu0 %v1895_v11 }
 0x174   : > { %v853_v29 = vmul.f32 %v2122_v25, %v848_v27 }
 0x176   : > { %v858_v30 = vadd.f32 %v2123_v28, %v853_v29 }
 0x177   : > { %1099 = vmatpush.bf16.msrb.mxu0 %v1894_v15 }
 0x178   : > { %v859_v31 = vpack.c.bf16 %v858_v30, %v858_v30 }
 0x17a   : > { %1790 = vmatmul.msk.bf16.vlgmr.msra.gmra.mxu0 %vm819_vm0, %v859_v31 }
 0x1f7   : > { %v892_v44 = vpop.f32.mrf.mxu0 }
 0x1f8   : > { %v3067_v45 = vadd.f32 %v2124_v42, %v892_v44 }
 0x1fa   : > { %v897_v47 = vsel %vm896_vm5, %v3067_v45, 0.0  ;;  %v912_v48 = vmul.f32 %v3067_v45, %v3067_v45 }
 0x1fb   : > { %v898_v49 = vrot.slane %v897_v47, 4 }
 0x1fc   : > { %v913_v50 = vsel %vm896_vm5, %v912_v48, 0.0 }
 0x1fd   : > { %v899_v52 = vadd.f32 %v898_v49, %v897_v47  ;;  %v914_v53 = vrot.slane %v913_v50, 4 }
 0x1ff   : > { %v894_v54 = vpop.f32.mrf.mxu0  ;;  %v900_v55 = vrot.slane %v899_v52, 2  ;;  %v915_v56 = vadd.f32 %v914_v53, %v913_v50 }
 0x201   : > { %v901_v58 = vadd.f32 %v900_v55, %v899_v52  ;;  %v916_v59 = vrot.slane %v915_v56, 2 }
 0x203   : > { %v902_v60 = vrot.slane %v901_v58, 1  ;;  %v917_v61 = vadd.f32 %v916_v59, %v915_v56 }
 0x205   : > { %v903_v63 = vadd.f32 %v902_v60, %v901_v58  ;;  %v918_v0 = vrot.slane %v917_v61, 1 }
 0x207   : > { %v911_v1 = vmul.f32 %v3074_v62, %v903_v63  ;;  %v919_v2 = vadd.f32 %v918_v0, %v917_v61 }
 0x209   : > { %1791 = vmatmul.msk.f32.vlgmr.msra.gmra.mxu1 %vm896_vm5, %v911_v1  ;;  %v920_v3 = vmul.f32 %v919_v2, %v3074_v62 }
 0x20b   : > { %1792 = vmatmul.msk.f32.vlgmr.msra.gmra.mxu2 %vm896_vm5, %v920_v3 }
 0x286   : > { %v949_v13 = vpop.f32.mrf.mxu1 }
 0x287   : > { %v975_v17 = vmul.f32 %v949_v13, %v949_v13  ;;  %v978_v27 = vperm.slane %v949_v13, 0 }
 0x289   : > { %v979_v30 = vsub.f32 %v3067_v45, %v978_v27 }
 0x28e   : > { %v972_v18 = vpop.f32.mrf.mxu2 }
 0x28f   : > { %v976_v19 = vsub.f32 %v972_v18, %v975_v17 }
 0x291   : > { %v977_v20 = vmax.f32 %v976_v19, 0.0 }
 0x293   : > { %v980_v21 = vadd.f32 1e-05, %v977_v20 }
 0x295   : > { %2138 = vrsqrt.f32 %v980_v21  ;;  %vm987_vm8 = vweird.f32 %v980_v21 }
 0x29b   : > { %v2139_v22 = vpop.eup %2138 }
 0x29c   : > { %v982_v23 = vmul.f32 %v2139_v22, %v980_v21  ;;  %vm988_vm7 = vweird.f32 %v2139_v22 }
 0x29d   : > { %vm989_vm9 = vmor %vm987_vm8, %vm988_vm7 }
 0x29e   : > { %v983_v24 = vmul.f32 %v2139_v22, %v982_v23 }
 0x2a0   : > { %v984_v25 = vmul.f32 0.5, %v983_v24 }
 0x2a2   : > { %v985_v26 = vsub.f32 1.5, %v984_v25 }
 0x2a4   : > { %v986_v28 = vmul.f32 %v2139_v22, %v985_v26 }
 0x2a6   : > { %v990_v29 = vsel %vm989_vm9, %v2139_v22, %v986_v28 }
 0x2a7   : > { %v991_v31 = vperm.slane %v990_v29, 0 }
 0x2a9   : > { %v992_v33 = vmul.f32 %v991_v31, %v979_v30 }
 0x2ab   : > { %v997_v35 = vmul.f32 %v2125_v32, %v992_v33 }
 0x2ad   : > { %v1002_v36 = vadd.f32 %v2126_v34, %v997_v35 }
 0x2af   : > { %v1003_v37 = vpack.c.bf16 %v1002_v36, %v1002_v36 }
 0x2b1   : > { %1809 = vmatmul.msk.bf16.vlgmr.msra.gmra.mxu3 %vm896_vm5, %v1003_v37  ;;  %1826 = vmatmul.msk.bf16.vlgmr.msrb.gmra.mxu0 %vm896_vm5, %v1003_v37 }
 0x2b2   : > { %1843 = vmatmul.msk.bf16.vlgmr.msrb.gmra.mxu1 %vm896_vm5, %v1003_v37 }
 0x32e   : > { %v1101_v40 = vpop.f32.mrf.mxu0 }
 0x32f   : > { %v1102_v41 = vadd.f32 %v2127_v38, %v1101_v40  ;;  %v1150_v42 = vpop.f32.mrf.mxu1 }
 0x330   : > { %v1151_v43 = vadd.f32 %v2128_v39, %v1150_v42 }
 0x331   : > { %v1156_v44 = vpack.c.bf16 %v1102_v41, %v1102_v41 }
 0x332   : > { %v3084_v47 = vpack.c.bf16 %v1151_v43, %v1151_v43 }
 0x333   : > { %v1217_v48 = vunpack.c.l.b16 %v1156_v44  ;;  %v1163_v49 = vsel %vm1158_vm10, %v1156_v44, 0 }
 0x334   : > { %v1052_v50 = vpop.f32.mrf.mxu3  ;;  %1172 = vmatpush.bf16.xpose.msrb.mxu2 %v1163_v49  ;;  %v1196_v51 = vsel %vm1194_vm11, %v3084_v47, 0  ;;  %v1253_v24 = vunpack.c.l.b16 %v3084_v47 }
 0x335   : > { %v1218_v52 = vpack.c.b16 %v1217_v48, %v1217_v48  ;;  %v1053_v53 = vadd.f32 %v2129_v46, %v1052_v50  ;;  %1205 = vmatpush.bf16.msrb.mxu3 %v1196_v51 }
 0x336   : > { %v1103_v54 = vpop.f32.mrf.mxu0  ;;  %v1254_v25 = vpack.c.b16 %v1253_v24, %v1253_v24  ;;  %v2130_v24 = vld [vmem:[#allocation23] ss:$0 sm:$0xff] }
 0x337   : > { %v1154_v55 = vmul.f32 0.25, %v1053_v53  ;;  %v1152_v56 = vpop.f32.mrf.mxu1  ;;  %1278 = vrot.lane.b32.xlu2 %v1218_v52, %s2758_s29  ;;  %1219 = vrot.lane.b32.xlu1 %v1218_v52, %s2759_s27 }
 0x339   : > { %v1155_v57 = vpack.c.bf16 %v1154_v55, %v1154_v55 }
 0x33b   : > { %v1212_v58 = vunpack.c.l.b16 %v1155_v57  ;;  %1844 = vmatmul.msk.bf16.vlgmr.msrb.gmra.mxu2 %vm1158_vm10, %v1155_v57 }
 0x33c   : > { %v1054_v59 = vpop.f32.mrf.mxu3 }
 0x33d   : > { %v1213_v60 = vpack.c.b16 %v1212_v58, %v1212_v58 }
 0x33f   : > { %1334 = vrot.lane.b32.xlu2 %v1218_v52, %s2760_s23  ;;  %1276 = vrot.lane.b32.xlu0 %v1213_v60, %s2758_s29 }
 0x340   : > { %1214 = vrot.lane.b32.xlu1 %v1213_v60, %s2759_s27 }
 0x348   : > { %1332 = vrot.lane.b32.xlu1 %v1213_v60, %s2760_s23 }
 0x391   : > { %v1279_v61 = vpop.permute.xlu2 %1278 }
 0x392   : > { %v1284_v63 = vsel %vm1158_vm10, %v1279_v61, 0 }
 0x393   : > { %1293 = vmatpush.bf16.xpose.msra.mxu1 %v1284_v63 }
 0x399   : > { %v1335_v0 = vpop.permute.xlu2 %1334 }
 0x39a   : > { %v1340_v3 = vsel %vm1158_vm10, %v1335_v0, 0 }
 0x3a9   : > { %v1220_v1 = vpop.permute.xlu1 %1219 }
 0x3aa   : > { %v1225_v2 = vsel %vm1158_vm10, %v1220_v1, 0 }
 0x3ab   : > { %1234 = vmatpush.bf16.xpose.msra.mxu0 %v1225_v2 }
 0x3b1   : > { %v1277_v4 = vpop.permute.xlu0 %1276 }
 0x3b2   : > { %v1215_v5 = vpop.permute.xlu1 %1214  ;;  %1848 = vmatmul.msk.bf16.vlgmr.msra.gmra.mxu1 %vm1158_vm10, %v1277_v4 }
 0x3b3   : > { %1349 = vmatpush.bf16.xpose.msrb.mxu0 %v1340_v3 }
 0x3b4   : > { %1846 = vmatmul.msk.bf16.vlgmr.msra.gmra.mxu0 %vm1158_vm10, %v1215_v5 }
 0x3ba   : > { %v1333_v8 = vpop.permute.xlu1 %1332 }
 0x3be   : > { %v1174_v6 = vpop.f32.mrf.mxu2 }
 0x3bf   : > { %v1179_v7 = vsel %vm1178_vm12, %v1174_v6, -inf }
 0x3c0   : > { %1180 = vmax.xlane.f32.xlu2 %v1179_v7 }
 0x3c4   : > { %1850 = vmatmul.msk.bf16.vlgmr.msrb.gmra.mxu0 %vm1158_vm10, %v1333_v8 }
 0x3c6   : > { %v1176_v9 = vpop.f32.mrf.mxu2 }
 0x3c7   : > { %v1905_v9 = vld [vmem:[#allocation22 + $0x18] sm:$0xff] }
 0x3c8   : > { %1444 = vmatpush.bf16.msrb.mxu1 %v1905_v9 }
 0x42f   : > { %v1295_v10 = vpop.f32.mrf.mxu1 }
 0x430   : > { %v1299_v12 = vsel %vm1178_vm12, %v1295_v10, -inf }
 0x431   : > { %v1236_v11 = vpop.f32.mrf.mxu0  ;;  %1300 = vmax.xlane.f32.xlu0 %v1299_v12  ;;  %v1902_v12 = vld [vmem:[#allocation22] sm:$0xff] }
 0x432   : > { %v1240_v13 = vsel %vm1178_vm12, %v1236_v11, -inf }
 0x433   : > { %1241 = vmax.xlane.f32.xlu1 %v1240_v13  ;;  %v1181_v14 = vpop.xlane.xlu2 %1180  ;;  %v1909_v13 = vld [vmem:[#allocation25 + $0x18] sm:$0xff] }
 0x434   : > { %v1182_v16 = vsub.f32 %v1174_v6, %v1181_v14  ;;  %v1908_v14 = vld [vmem:[#allocation25 + $0x10] sm:$0xff] }
 0x436   : > { %v1183_v18 = vmul.f32 1.442695, %v1182_v16 }
 0x437   : > { %v1297_v15 = vpop.f32.mrf.mxu1 }
 0x438   : > { %2140 = vpow2.f32 %v1183_v18 }
 0x439   : > { %v1238_v17 = vpop.f32.mrf.mxu0 }
 0x43e   : > { %v2141_v21 = vpop.eup %2140 }
 0x43f   : > { %v1185_v23 = vsel %vm1178_vm12, %v2141_v21, 0.0 }
 0x441   : > { %v1351_v19 = vpop.f32.mrf.mxu0 }
 0x442   : > { %v1355_v20 = vsel %vm1178_vm12, %v1351_v19, -inf }
 0x443   : > { %1356 = vmax.xlane.f32.xlu2 %v1355_v20 }
 0x449   : > { %v1353_v22 = vpop.f32.mrf.mxu0 }
 0x44a   : > { %v1907_v22 = vld [vmem:[#allocation25 + $0x8] sm:$0xff] }
 0x44b   : > { %1186 = vadd.xlane.f32.xlu2 %v1185_v23  ;;  %v1906_v23 = vld [vmem:[#allocation25] sm:$0xff] }
 0x463   : > { %1255 = vrot.lane.b32.xlu2 %v1254_v25, %s2759_s27 }
 0x4a4   : > { %v1301_v26 = vpop.xlane.xlu0 %1300 }
 0x4a5   : > { %v1302_v29 = vsub.f32 %v1295_v10, %v1301_v26  ;;  %v1904_v10 = vld [vmem:[#allocation22 + $0x10] sm:$0xff] }
 0x4a6   : > { %v1242_v27 = vpop.xlane.xlu1 %1241  ;;  %1445 = vmatpush.bf16.msrb.mxu1 %v1904_v10 }
 0x4a7   : > { %v1243_v28 = vsub.f32 %v1236_v11, %v1242_v27  ;;  %v1303_v31 = vmul.f32 1.442695, %v1302_v29  ;;  %v1903_v11 = vld [vmem:[#allocation22 + $0x8] sm:$0xff] }
 0x4a9   : > { %v1244_v30 = vmul.f32 1.442695, %v1243_v28 }
 0x4aa   : > { %1446 = vmatpush.bf16.msrb.mxu1 %v1903_v11 }
 0x4ab   : > { %2142 = vpow2.f32 %v1244_v30  ;;  %v2131_v30 = vld [vmem:[#allocation26] ss:$0 sm:$0xff] }
 0x4ac   : > { %2144 = vpow2.f32 %v1303_v31 }
 0x4ae   : > { %1447 = vmatpush.bf16.msrb.mxu1 %v1902_v12 }
 0x4b1   : > { %v2143_v32 = vpop.eup %2142 }
 0x4b2   : > { %v1246_v33 = vsel %vm1178_vm12, %v2143_v32, 0.0  ;;  %v2145_v35 = vpop.eup %2144 }
 0x4b3   : > { %1247 = vadd.xlane.f32.xlu1 %v1246_v33  ;;  %v1305_v38 = vsel %vm1178_vm12, %v2145_v35, 0.0 }
 0x4b6   : > { %v1357_v34 = vpop.xlane.xlu2 %1356 }
 0x4b7   : > { %v1358_v36 = vsub.f32 %v1351_v19, %v1357_v34 }
 0x4b9   : > { %v1359_v37 = vmul.f32 1.442695, %v1358_v36 }
 0x4bb   : > { %2146 = vpow2.f32 %v1359_v37  ;;  %1306 = vadd.xlane.f32.xlu1 %v1305_v38 }
 0x4be   : > { %v1187_v39 = vpop.xlane.xlu2 %1186 }
 0x4bf   : > { %2148 = vrcp.f32 %v1187_v39 }
 0x4c1   : > { %v2147_v40 = vpop.eup %2146 }
 0x4c2   : > { %v1361_v41 = vsel %vm1178_vm12, %v2147_v40, 0.0 }
 0x4c3   : > { %1362 = vadd.xlane.f32.xlu0 %v1361_v41 }
 0x4c5   : > { %v2149_v42 = vpop.eup %2148 }
 0x4c6   : > { %v1189_v43 = vmul.f32 %v2149_v42, %v2141_v21  ;;  %v1256_v44 = vpop.permute.xlu2 %1255 }
 0x4c7   : > { %v1261_v46 = vsel %vm1194_vm11, %v1256_v44, 0 }
 0x4c8   : > { %1270 = vmatpush.bf16.msra.mxu2 %v1261_v46  ;;  %v1190_v47 = vpack.c.bf16 %v1189_v43, %v1189_v43 }
 0x4ca   : > { %1845 = vmatmul.msk.bf16.vlgmr.msrb.gmra.mxu3 %vm1178_vm12, %v1190_v47 }
 0x4d4   : > { %1311 = vrot.lane.b32.xlu1 %v1254_v25, %s2758_s29  ;;  %s2650_s29 = sshra.s32 %s1536_s28, 4  ;;  %s2651_s29 = int_to_ptr.hbm [resolvable:$true] %s2650_s29 }
 0x4d5   : > { %s2652_s27 = scalar_lea.hbm %s2651_s29, 1  ;;  %p2657_p3 = scmp.lt.s32.totalorder %s2651_s29, %s3219_s25 }
 0x4d6   : > { %p2653_p0 = scmp.ne.s32.totalorder %s2651_s29, %s2652_s27 }
 0x4d7   : > { %1367 = vrot.lane.b32.xlu0 %v1254_v25, %s2760_s23 }
 0x4d8   : > { %p2654_p1 = pnand %p2653_p0, %p2897_p5 }
 0x4da   : > { %p2655_p2 = pneg %p2654_p1 }
 0x526   : > { %v1248_v48 = vpop.xlane.xlu1 %1247 }
 0x527   : > { %2150 = vrcp.f32 %v1248_v48 }
 0x52d   : > { %v2151_v49 = vpop.eup %2150 }
 0x52e   : > { %v1250_v50 = vmul.f32 %v2151_v49, %v2143_v32  ;;  %v1307_v52 = vpop.xlane.xlu1 %1306 }
 0x52f   : > { %2152 = vrcp.f32 %v1307_v52 }
 0x530   : > { %v1251_v51 = vpack.c.bf16 %v1250_v50, %v1250_v50 }
 0x532   : > { %1847 = vmatmul.msk.bf16.vlgmr.msra.gmra.mxu2 %vm1178_vm12, %v1251_v51 }
 0x535   : > { %v2153_v54 = vpop.eup %2152 }
 0x536   : > { %v1363_v53 = vpop.xlane.xlu0 %1362  ;;  %v1309_v56 = vmul.f32 %v2153_v54, %v2145_v35 }
 0x537   : > { %2154 = vrcp.f32 %v1363_v53 }
 0x538   : > { %v1310_v60 = vpack.c.bf16 %v1309_v56, %v1309_v56 }
 0x53d   : > { %v2155_v55 = vpop.eup %2154 }
 0x53e   : > { %v1365_v59 = vmul.f32 %v2155_v55, %v2147_v40 }
 0x540   : > { %v1366_v0 = vpack.c.bf16 %v1365_v59, %v1365_v59 }
 0x546   : > { %v1312_v57 = vpop.permute.xlu1 %1311 }
 0x547   : > { %v1317_v58 = vsel %vm1194_vm11, %v1312_v57, 0 }
 0x548   : > { %1326 = vmatpush.bf16.msra.mxu3 %v1317_v58 }
 0x549   : > { %v1368_v61 = vpop.permute.xlu0 %1367 }
 0x54a   : > { %v1373_v63 = vsel %vm1194_vm11, %v1368_v61, 0 }
 0x54b   : > { %1849 = vmatmul.msk.bf16.vlgmr.msra.gmra.mxu3 %vm1178_vm12, %v1310_v60  ;;  %1382 = vmatpush.bf16.msrb.mxu2 %v1373_v63 }
 0x54c   : > { %1503 = vmatpush.bf16.msrb.mxu3 %v1909_v13 }
 0x54d   : > { %v1207_v1 = vpop.f32.mrf.mxu3 }
 0x54e   : > { %1851 = vmatmul.msk.bf16.vlgmr.msrb.gmra.mxu2 %vm1178_vm12, %v1366_v0 }
 0x550   : > { %1504 = vmatpush.bf16.msrb.mxu3 %v1908_v14 }
 0x554   : > { %1505 = vmatpush.bf16.msrb.mxu3 %v1907_v22 }
 0x555   : > { %v1209_v2 = vpop.f32.mrf.mxu3 }
 0x558   : > { %1506 = vmatpush.bf16.msrb.mxu3 %v1906_v23 }
 0x5b5   : > { %v1272_v3 = vpop.f32.mrf.mxu2 }
 0x5b6   : > { %1389 = vrot.lane.b32.xlu2 %v1272_v3, %s2761_s30  ;;  %s2656_s30 = scalar_lea.hbm %s3219_s25, 2 }
 0x5b7   : > { %p2658_p4 = scmp.lt.s32.totalorder %s2656_s30, %s2652_s27 }
 0x5b9   : > { %p2659_p7 = por %p2658_p4, %p2657_p3 }
 0x5bb   : > { %p2660_p8 = pnand %p2659_p7, %p2655_p2 }
 0x5bd   : > { %v1274_v4 = vpop.f32.mrf.mxu2 }
 0x5ce   : > { %v1328_v5 = vpop.f32.mrf.mxu3 }
 0x5cf   : > { %1393 = vrot.lane.b32.xlu2 %v1328_v5, %s2762_s5 }
 0x5d1   : > { %v1384_v6 = vpop.f32.mrf.mxu2 }
 0x5d2   : > { %1397 = vrot.lane.b32.xlu0 %v1384_v6, %s2763_s19 }
 0x5d6   : > { %v1330_v7 = vpop.f32.mrf.mxu3 }
 0x5d9   : > { %v1386_v8 = vpop.f32.mrf.mxu2 }
 0x610   : > { %v1390_v15 = vpop.permute.xlu2 %1389 }
 0x611   : > { %v1400_v17 = vsel %vm1158_vm10, %v1207_v1, %v1390_v15 }
 0x629   : > { %v1394_v16 = vpop.permute.xlu2 %1393 }
 0x62a   : > { %v1401_v18 = vsel %vm819_vm0, %v1400_v17, %v1394_v16 }
 0x644   : > { %v1398_v19 = vpop.permute.xlu0 %1397 }
 0x645   : > { %v1403_v20 = vsel %vm1402_vm13, %v1401_v18, %v1398_v19 }
 0x646   : > { %v1404_v21 = vpack.c.bf16 %v1403_v20, %v1403_v20 }
 0x648   : > { %1868 = vmatmul.msk.bf16.vlgmr.msrb.gmra.mxu1 %vm896_vm5, %v1404_v21 }
 0x6c5   : > { %v1449_v25 = vpop.f32.mrf.mxu1 }
 0x6c6   : > { %v1453_v26 = vadd.f32 %v1449_v25, %v3067_v45 }
 0x6c8   : > { %v1458_v27 = vadd.f32 %v2130_v24, %v1453_v26 }
 0x6ca   : > { %v1459_v28 = vpack.c.bf16 %v1458_v27, %v1458_v27 }
 0x6cc   : > { %1885 = vmatmul.msk.bf16.vlgmr.msrb.gmra.mxu3 %vm896_vm5, %v1459_v28 }
 0x6cd   : > { %v1451_v29 = vpop.f32.mrf.mxu1 }
 0x74f   : > { %v1508_v31 = vpop.f32.mrf.mxu3 }
 0x750   : > { %v1509_v32 = vadd.f32 %v2131_v30, %v1508_v31 }
 0x752   : > { %v1512_v33 = vsel %vm896_vm5, %v1509_v32, 0.0 }
 0x753   : > { %v1513_v34 = vrot.slane %v1512_v33, 4 }
 0x755   : > { %v1514_v35 = vadd.f32 %v1513_v34, %v1512_v33 }
 0x757   : > { %v1515_v36 = vrot.slane %v1514_v35, 2  ;;  %v1510_v37 = vpop.f32.mrf.mxu3 }
 0x759   : > { %v1516_v38 = vadd.f32 %v1515_v36, %v1514_v35 }
 0x75b   : > { %v1517_v45 = vrot.slane %v1516_v38, 1 }
 0x75d   : > { %v1518_v39 = vadd.f32 %v1517_v45, %v1516_v38 }
 0x75f   : > { %v1519_v40 = vmul.f32 %v1518_v39, %v3074_v62 }
 0x761   : > { %1521 = vst.msk [vmem:[%s812_s2] sm:$0x1] %vm1520_vm14, %v1519_v40 }
 0x762   : > { %2663 = shalt.err (!%p2660_p8)
}
 0x763   : > { %1974 = dma.vmem_to_hbm [thread:$0]  (%p2897_p5), %s1534_s18, 16, %s1536_s28, %s1523_s21  }
 0x764 PF: > { %s3221_s3 = sld [smem:[#allocation42_spill]] }
 0x765   : > { %s3222_s26 = sld [smem:[#allocation39_spill]] }
 0x76a   : > { %p2061_p9 = scmp.ge.s32.totalorder %s3221_s3, 2 }
 0x76b   : > { %s1547_s24 = sand.u32 1, %s3222_s26  }
 0x76c   : > { %p2026_p10 = pnand %p2061_p9, %p2901_p6  ;;  %s1548_s1 = scalar_lea.sflag [#allocation4], %s1547_s24 }
 0x76e   : > { %p2027_p11 = pneg %p2026_p10 }
 0x770   : > { %2717 = dma.done.wait (%p2027_p11), %s1548_s1, 16  }
 0x771   : > { %2719 = vsyncadd (%p2027_p11), %s1548_s1, 4294967280  ;;  %s3224_s30 = sld [smem:[#allocation43_spill]] }
 0x772   : > { %s3225_s27 = sld [smem:[#allocation40_spill]] }
 0x773   : > { %s3226_s28 = sld [smem:[#allocation41_spill]] }
 0x774   : > { %s3227_s29 = sld [smem:[#allocation44_spill]] }
 0x777   : > { %p37_p12 = scmp.ge.s32.totalorder %s3224_s30, 4  }
 0x779   :  { %39 = sbr.rel (!%p37_p12) target bundleno = 19 (0x13), region = 192 }
 0x77e   :  { %1553 = vsyncpa [#allocation3], 1 }
 0x77f   :  { %1555 = vsyncpa [#allocation3 + $0x1], 1 }
 0x780   :  { %1556 = vsyncpa [#allocation6], 1 }
 0x781   :  { %1557 = vsyncpa [#allocation9], 1 }
 0x782   :  { %1558 = vsyncpa [#allocation12], 1 }
 0x783   :  { %1559 = vsyncpa [#allocation15], 1 }
 0x784   :  { %1560 = vsyncpa [#allocation18], 1 }
 0x785   :  { %1561 = vsyncpa [#allocation21], 1 }
 0x786   :  { %1562 = vsyncpa [#allocation24], 1 }
 0x787   :  { %1563 = vsyncpa [#allocation27], 1 }
 0x788   :  { %1564 = vsyncpa [#allocation4], 1 }
 0x789   :  { %1566 = vsyncpa [#allocation4 + $0x1], 1 }

</bundles_post_ra>
